<compile_context>
chip_gen: v7x
topology: tpu7x:2x2x1
jax: 0.10.0
libtpu: 0.0.40
codegen_flags: <defaults>
</compile_context>

<pallas_src>
import functools
import math

import jax
import jax.numpy as jnp
from jax import lax
from jax.experimental import pallas as pl
from jax.experimental.pallas import tpu as pltpu


def _round_up(x, m):
    return ((x + m - 1) // m) * m


# ---------------------------------------------------------------------------
# Pallas kernel: one (batch, row-tile) step of the fused ConvMGU cell.
# ---------------------------------------------------------------------------
def _convmgu_kernel(xt_ref, w_ref, hx_ref, out_ref, *, C_hp, Wp, THWp, k, d):
    """
    xt_ref : (C_totp, Lp)     bf16  flat padded-pixel tile of concat(x, hx, 1) + halo
    w_ref  : (k*k*G, C_totp)  bf16  fused per-tap weights, G = 3*C_hp rows per tap
    hx_ref : (C_hp, THWp)     f32   hidden state, padded-pixel layout (for gating)
    out_ref: (C_hp, THWp)           new hidden state
    """
    G = 3 * C_hp
    acc = None
    t = 0
    for ky in range(k):
        for kx in range(k):
            s = ky * d * Wp + kx * d                 # static flat tap offset
            tap = xt_ref[:, s:s + THWp]              # (C_totp, THWp) bf16
            w_t = w_ref[t * G:(t + 1) * G, :]        # (G, C_totp)    bf16
            part = jnp.dot(w_t, tap, preferred_element_type=jnp.float32)
            acc = part if acc is None else acc + part
            t += 1

    # 8-aligned sublane slices of the accumulator (C_hp is a multiple of 8).
    f = jax.nn.sigmoid(acc[:C_hp, :])
    c = jnp.tanh(acc[C_hp:2 * C_hp, :] + f * acc[2 * C_hp:, :])
    hx = hx_ref[...]
    out_ref[...] = (c + f * (hx - c)).astype(out_ref.dtype)


# ---------------------------------------------------------------------------
# Tile selection: biggest row tile that fits the per-generation VMEM budget.
# ---------------------------------------------------------------------------
def _vmem_limit_bytes():
    phys = 64 * 1024 * 1024                       # conservative default (v7x per-core)
    try:
        info = pltpu.get_tpu_info()
        cap = getattr(info, "vmem_capacity_bytes", None)
        if cap:
            phys = int(cap)
    except Exception:
        pass
    return min(phys * 3 // 4, 100 * 1024 * 1024)  # ~48 MiB on v7x, ~96 MiB on v5e/v6e


def _tile_bytes(TH, Wp, p, C_totp, C_hp, kk):
    G = 3 * C_hp
    THWp = TH * Wp
    Lp = _round_up(THWp + 2 * p * Wp + 2 * p, 128)
    xt = C_totp * Lp * 2                          # bf16 input tile
    hxb = C_hp * THWp * 4
    outb = C_hp * THWp * 4
    wb = kk * G * C_totp * 2
    acc = G * THWp * 4                            # f32 accumulator
    tap = C_totp * THWp * 2                       # one shifted-slice temp
    gates = 3 * C_hp * THWp * 4                   # f / c / temporaries
    return 2 * (xt + hxb + outb + wb) + acc + tap + gates   # 2x = double buffering


def _pick_rows(B, H, Wp, p, C_totp, C_hp, kk, budget):
    m = 128 // math.gcd(Wp, 128)                  # TH multiple of m -> TH*Wp % 128 == 0
    TH = _round_up(H, m)                          # whole image in one tile if it fits
    while TH > m and _tile_bytes(TH, Wp, p, C_totp, C_hp, kk) > budget:
        TH = max(m, _round_up(TH // 2, m))
    if B == 1 and -(-H // TH) == 1:               # give both v7x TensorCores work
        TH2 = _round_up(-(-H // 2), m)
        if 0 < TH2 < TH:
            TH = TH2
    n_h = -(-H // TH)
    return TH, n_h


# ---------------------------------------------------------------------------
# Wrapper: layout / weight-fusion glue (plain JAX) + pallas_call.
# ---------------------------------------------------------------------------
def conv_mgu_cell(x, hx, w_ih, w_hh, b_ih, *, kernel_size, dilation=1):
    """ConvMGUCell forward (NCHW, matching the PyTorch module).

    x    : (B, C_in, H, W) float32
    hx   : (B, C_h , H, W) float32
    w_ih : (2*C_h, C_in, k, k)  (PyTorch OIHW)
    w_hh : (2*C_h, C_h , k, k)
    b_ih : (2*C_h,) or None
    returns: (B, C_h, H, W)
    """
    B, C_in, H, W = x.shape
    C_h = hx.shape[1]
    k, d = kernel_size, dilation
    if k % 2 != 1:
        raise ValueError("Pallas ConvMGUCell requires an odd kernel_size "
                         "(the module's trunc-div padding only preserves H,W for odd k).")
    kk = k * k
    p = (d * (k - 1)) // 2
    C_tot = C_in + C_h
    C_totp = _round_up(C_tot + 1, 8)              # +1 ones channel (bias), sublane pad
    C_hp = _round_up(C_h, 8)                      # gate blocks 8-aligned
    G = 3 * C_hp

    Wp = _round_up(W + 2 * p, 8)                  # padded row width (lane stride)
    vmem_limit = _vmem_limit_bytes()
    TH, n_h = _pick_rows(B, H, Wp, p, C_totp, C_hp, kk, int(vmem_limit * 0.85))
    H_t = n_h * TH
    THWp = TH * Wp
    Lp = _round_up(THWp + 2 * p * Wp + 2 * p, 128)

    f32, bf16 = jnp.float32, jnp.bfloat16

    # ---- bf16 conv input: concat(x, hx, ones) -> spatial pad -> flat halo tiles ----
    ones = jnp.ones((B, 1, H, W), f32)
    xh = jnp.concatenate([x, hx, ones], axis=1).astype(bf16)       # (B, C_tot+1, H, W)
    xh = jnp.pad(xh, ((0, 0), (0, C_totp - C_tot - 1),
                      (p, H_t + p - H), (p, Wp - W - p)))          # (B,C_totp,H_t+2p,Wp)
    flat = xh.reshape(B, C_totp, (H_t + 2 * p) * Wp)
    need = (n_h - 1) * THWp + Lp
    if need > flat.shape[-1]:
        flat = jnp.pad(flat, ((0, 0), (0, 0), (0, need - flat.shape[-1])))
    xt = jnp.stack([flat[:, :, i * THWp: i * THWp + Lp] for i in range(n_h)],
                   axis=1)                                         # (B, n_h, C_totp, Lp)

    # ---- hidden state for the gating path: f32, padded-pixel layout ----
    hx_flat = jnp.pad(hx, ((0, 0), (0, C_hp - C_h), (0, H_t - H), (0, Wp - W))
                      ).reshape(B, C_hp, H_t * Wp)

    # ---- fused per-tap weights: rows = [f_sum | ih_c | hh_c], cols = channels ----
    wih = jnp.transpose(w_ih, (2, 3, 0, 1)).astype(f32)            # (k,k,2C_h,C_in)
    whh = jnp.transpose(w_hh, (2, 3, 0, 1)).astype(f32)            # (k,k,2C_h,C_h)
    wf = jnp.zeros((k, k, G, C_totp), f32)
    wf = wf.at[:, :, 0:C_h, 0:C_in].set(wih[:, :, :C_h, :])                   # ih_f
    wf = wf.at[:, :, 0:C_h, C_in:C_tot].set(whh[:, :, :C_h, :])               # + hh_f
    wf = wf.at[:, :, C_hp:C_hp + C_h, 0:C_in].set(wih[:, :, C_h:, :])         # ih_c
    wf = wf.at[:, :, 2 * C_hp:2 * C_hp + C_h, C_in:C_tot].set(whh[:, :, C_h:, :])  # hh_c
    if b_ih is not None:
        c0 = k // 2                                # bias via centre-tap ones channel
        wf = wf.at[c0, c0, 0:C_h, C_tot].set(b_ih[:C_h])
        wf = wf.at[c0, c0, C_hp:C_hp + C_h, C_tot].set(b_ih[C_h:])
    wf = wf.reshape(kk * G, C_totp).astype(bf16)

    kern = functools.partial(_convmgu_kernel, C_hp=C_hp, Wp=Wp, THWp=THWp, k=k, d=d)

    out_flat = pl.pallas_call(
        kern,
        out_shape=jax.ShapeDtypeStruct((B, C_hp, H_t * Wp), x.dtype),
        grid_spec=pltpu.PrefetchScalarGridSpec(
            num_scalar_prefetch=0,
            grid=(B, n_h),
            in_specs=[
                pl.BlockSpec((None, None, C_totp, Lp), lambda b, i: (b, i, 0, 0)),
                pl.BlockSpec((kk * G, C_totp), lambda b, i: (0, 0)),
                pl.BlockSpec((None, C_hp, THWp), lambda b, i: (b, 0, i)),
            ],
            out_specs=pl.BlockSpec((None, C_hp, THWp), lambda b, i: (b, 0, i)),
        ),
        compiler_params=pltpu.CompilerParams(
            dimension_semantics=("parallel", "parallel"),
            vmem_limit_bytes=int(vmem_limit)),
        # Note: when this cell is driven inside a scan, add
        # input_output_aliases={2: 0} so the recurrent state is updated in place.
    )(xt, wf, hx_flat)

    out = out_flat.reshape(B, C_hp, H_t, Wp)[:, :C_h, :H, :W]
    return out


# ---------------------------------------------------------------------------
# Deterministic parameter init (the module ends up with xavier_uniform weights)
# ---------------------------------------------------------------------------
def xavier_uniform(key, shape, gain=1.0):
    """shape = (O, I, kH, kW)."""
    fan_in = shape[1] * shape[2] * shape[3]
    fan_out = shape[0] * shape[2] * shape[3]
    bound = gain * jnp.sqrt(6.0 / (fan_in + fan_out))
    return jax.random.uniform(key, shape, jnp.float32, -bound, bound)


# ---------------------------------------------------------------------------
# Pure-JAX reference (for correctness check)
# ---------------------------------------------------------------------------
def conv_mgu_ref(x, hx, w_ih, w_hh, b_ih, *, kernel_size, dilation,
                 matmul_dtype=jnp.float32):
    k, d = kernel_size, dilation
    pad = (d * (k - 1)) // 2
    C_h = hx.shape[1]

    def conv(inp, w, bias):
        y = lax.conv_general_dilated(
            inp.astype(matmul_dtype), w.astype(matmul_dtype),
            window_strides=(1, 1), padding=[(pad, pad), (pad, pad)],
            rhs_dilation=(d, d),
            dimension_numbers=("NCHW", "OIHW", "NCHW"),
            preferred_element_type=jnp.float32)
        if bias is not None:
            y = y + bias.reshape(1, -1, 1, 1)
        return y

    ih = conv(x, w_ih, b_ih)
    hh = conv(hx, w_hh, None)
    f = jax.nn.sigmoid(ih[:, :C_h] + hh[:, :C_h])
    c = jnp.tanh(ih[:, C_h:] + f * hh[:, C_h:])
    return c + f * (hx - c)


if __name__ == "__main__":
    B, C_in, C_h, H, W = 2, 4, 32, 16, 16
    k, d = 3, 1

    key = jax.random.PRNGKey(0)
    k_x, k_h, k_wih, k_whh = jax.random.split(key, 4)

    x = jax.random.normal(k_x, (B, C_in, H, W), jnp.float32)   # NCHW, like PyTorch
    hx = jax.random.normal(k_h, (B, C_h, H, W), jnp.float32)

    # reset_parameters(): orthogonal_ is immediately overwritten by
    # xavier_uniform_ (relu gain for ih, gain 1 for hh); ih bias zeroed.
    w_ih = xavier_uniform(k_wih, (2 * C_h, C_in, k, k), gain=jnp.sqrt(2.0))
    w_hh = xavier_uniform(k_whh, (2 * C_h, C_h, k, k), gain=1.0)
    b_ih = jnp.zeros((2 * C_h,), jnp.float32)

    fwd = jax.jit(functools.partial(conv_mgu_cell, kernel_size=k, dilation=d))
    out = jax.block_until_ready(fwd(x, hx, w_ih, w_hh, b_ih))

    # Reference with the same bf16 conv operands / f32 accumulation & gating.
    ref = conv_mgu_ref(x, hx, w_ih, w_hh, b_ih, kernel_size=k, dilation=d,
                       matmul_dtype=jnp.bfloat16)

    assert out.shape == (B, C_h, H, W)
    assert jnp.allclose(out, ref, atol=1e-2, rtol=1e-2), "mismatch vs reference"

    print("KERNEL_OK")
</pallas_src>

<mosaic_0001>
module attributes {stable_mosaic.version = 11 : i64} {
  func.func @_convmgu_kernel(%arg0: i32, %arg1: i32, %arg2: memref<1x1x40x512xbf16, #tpu.memory_space<vmem>>, %arg3: memref<864x40xbf16, #tpu.memory_space<vmem>>, %arg4: memref<1x32x384xf32, #tpu.memory_space<vmem>>, %arg5: memref<1x32x384xf32, #tpu.memory_space<vmem>>) attributes {dimension_semantics = [#tpu.dimension_semantics<parallel>, #tpu.dimension_semantics<parallel>], iteration_bounds = array<i64: 2, 1>, scalar_prefetch = 0 : i64, scratch_operands = 0 : i64, tpu.core_type = #tpu.core_type<tc>, window_params = [{transform_indices = @transform_0, window_bounds = array<i64: 1, 1, 40, 512>}, {pipeline_mode = #tpu.pipeline_mode<synchronous>, transform_indices = @transform_1, window_bounds = array<i64: 864, 40>}, {transform_indices = @transform_2, window_bounds = array<i64: 1, 32, 384>}, {transform_indices = @transform_3, window_bounds = array<i64: 1, 32, 384>}]} {
    %c0 = arith.constant 0 : index
    %c0_0 = arith.constant 0 : index
    %c0_1 = arith.constant 0 : index
    %c0_2 = arith.constant 0 : index
    %0 = vector.load %arg2[%c0, %c0_0, %c0_1, %c0_2] : memref<1x1x40x512xbf16, #tpu.memory_space<vmem>>, vector<1x1x40x384xbf16>
    %1 = vector.shape_cast %0 : vector<1x1x40x384xbf16> to vector<40x384xbf16>
    %c0_3 = arith.constant 0 : index
    %c0_4 = arith.constant 0 : index
    %2 = vector.load %arg3[%c0_3, %c0_4] : memref<864x40xbf16, #tpu.memory_space<vmem>>, vector<96x40xbf16>
    %cst = arith.constant dense<0.000000e+00> : vector<96x384xf32>
    %3 = tpu.matmul %2, %1, %cst {dimension_numbers = #tpu.dot_dimension_numbers<[1], [0], [0], [1], [0, 0, 1, 1], [], []>} : vector<96x40xbf16>, vector<40x384xbf16>, vector<96x384xf32> -> vector<96x384xf32>
    %c0_5 = arith.constant 0 : index
    %c0_6 = arith.constant 0 : index
    %c0_7 = arith.constant 0 : index
    %c1 = arith.constant 1 : index
    %4 = vector.load %arg2[%c0_5, %c0_6, %c0_7, %c1] : memref<1x1x40x512xbf16, #tpu.memory_space<vmem>>, vector<1x1x40x384xbf16>
    %5 = vector.shape_cast %4 : vector<1x1x40x384xbf16> to vector<40x384xbf16>
    %c96 = arith.constant 96 : index
    %c0_8 = arith.constant 0 : index
    %6 = vector.load %arg3[%c96, %c0_8] : memref<864x40xbf16, #tpu.memory_space<vmem>>, vector<96x40xbf16>
    %cst_9 = arith.constant dense<0.000000e+00> : vector<96x384xf32>
    %7 = tpu.matmul %6, %5, %cst_9 {dimension_numbers = #tpu.dot_dimension_numbers<[1], [0], [0], [1], [0, 0, 1, 1], [], []>} : vector<96x40xbf16>, vector<40x384xbf16>, vector<96x384xf32> -> vector<96x384xf32>
    %8 = arith.addf %3, %7 : vector<96x384xf32>
    %c0_10 = arith.constant 0 : index
    %c0_11 = arith.constant 0 : index
    %c0_12 = arith.constant 0 : index
    %c2 = arith.constant 2 : index
    %9 = vector.load %arg2[%c0_10, %c0_11, %c0_12, %c2] : memref<1x1x40x512xbf16, #tpu.memory_space<vmem>>, vector<1x1x40x384xbf16>
    %10 = vector.shape_cast %9 : vector<1x1x40x384xbf16> to vector<40x384xbf16>
    %c192 = arith.constant 192 : index
    %c0_13 = arith.constant 0 : index
    %11 = vector.load %arg3[%c192, %c0_13] : memref<864x40xbf16, #tpu.memory_space<vmem>>, vector<96x40xbf16>
    %cst_14 = arith.constant dense<0.000000e+00> : vector<96x384xf32>
    %12 = tpu.matmul %11, %10, %cst_14 {dimension_numbers = #tpu.dot_dimension_numbers<[1], [0], [0], [1], [0, 0, 1, 1], [], []>} : vector<96x40xbf16>, vector<40x384xbf16>, vector<96x384xf32> -> vector<96x384xf32>
    %13 = arith.addf %8, %12 : vector<96x384xf32>
    %c0_15 = arith.constant 0 : index
    %c0_16 = arith.constant 0 : index
    %c0_17 = arith.constant 0 : index
    %c24 = arith.constant 24 : index
    %14 = vector.load %arg2[%c0_15, %c0_16, %c0_17, %c24] : memref<1x1x40x512xbf16, #tpu.memory_space<vmem>>, vector<1x1x40x384xbf16>
    %15 = vector.shape_cast %14 : vector<1x1x40x384xbf16> to vector<40x384xbf16>
    %c288 = arith.constant 288 : index
    %c0_18 = arith.constant 0 : index
    %16 = vector.load %arg3[%c288, %c0_18] : memref<864x40xbf16, #tpu.memory_space<vmem>>, vector<96x40xbf16>
    %cst_19 = arith.constant dense<0.000000e+00> : vector<96x384xf32>
    %17 = tpu.matmul %16, %15, %cst_19 {dimension_numbers = #tpu.dot_dimension_numbers<[1], [0], [0], [1], [0, 0, 1, 1], [], []>} : vector<96x40xbf16>, vector<40x384xbf16>, vector<96x384xf32> -> vector<96x384xf32>
    %18 = arith.addf %13, %17 : vector<96x384xf32>
    %c0_20 = arith.constant 0 : index
    %c0_21 = arith.constant 0 : index
    %c0_22 = arith.constant 0 : index
    %c25 = arith.constant 25 : index
    %19 = vector.load %arg2[%c0_20, %c0_21, %c0_22, %c25] : memref<1x1x40x512xbf16, #tpu.memory_space<vmem>>, vector<1x1x40x384xbf16>
    %20 = vector.shape_cast %19 : vector<1x1x40x384xbf16> to vector<40x384xbf16>
    %c384 = arith.constant 384 : index
    %c0_23 = arith.constant 0 : index
    %21 = vector.load %arg3[%c384, %c0_23] : memref<864x40xbf16, #tpu.memory_space<vmem>>, vector<96x40xbf16>
    %cst_24 = arith.constant dense<0.000000e+00> : vector<96x384xf32>
    %22 = tpu.matmul %21, %20, %cst_24 {dimension_numbers = #tpu.dot_dimension_numbers<[1], [0], [0], [1], [0, 0, 1, 1], [], []>} : vector<96x40xbf16>, vector<40x384xbf16>, vector<96x384xf32> -> vector<96x384xf32>
    %23 = arith.addf %18, %22 : vector<96x384xf32>
    %c0_25 = arith.constant 0 : index
    %c0_26 = arith.constant 0 : index
    %c0_27 = arith.constant 0 : index
    %c26 = arith.constant 26 : index
    %24 = vector.load %arg2[%c0_25, %c0_26, %c0_27, %c26] : memref<1x1x40x512xbf16, #tpu.memory_space<vmem>>, vector<1x1x40x384xbf16>
    %25 = vector.shape_cast %24 : vector<1x1x40x384xbf16> to vector<40x384xbf16>
    %c480 = arith.constant 480 : index
    %c0_28 = arith.constant 0 : index
    %26 = vector.load %arg3[%c480, %c0_28] : memref<864x40xbf16, #tpu.memory_space<vmem>>, vector<96x40xbf16>
    %cst_29 = arith.constant dense<0.000000e+00> : vector<96x384xf32>
    %27 = tpu.matmul %26, %25, %cst_29 {dimension_numbers = #tpu.dot_dimension_numbers<[1], [0], [0], [1], [0, 0, 1, 1], [], []>} : vector<96x40xbf16>, vector<40x384xbf16>, vector<96x384xf32> -> vector<96x384xf32>
    %28 = arith.addf %23, %27 : vector<96x384xf32>
    %c0_30 = arith.constant 0 : index
    %c0_31 = arith.constant 0 : index
    %c0_32 = arith.constant 0 : index
    %c48 = arith.constant 48 : index
    %29 = vector.load %arg2[%c0_30, %c0_31, %c0_32, %c48] : memref<1x1x40x512xbf16, #tpu.memory_space<vmem>>, vector<1x1x40x384xbf16>
    %30 = vector.shape_cast %29 : vector<1x1x40x384xbf16> to vector<40x384xbf16>
    %c576 = arith.constant 576 : index
    %c0_33 = arith.constant 0 : index
    %31 = vector.load %arg3[%c576, %c0_33] : memref<864x40xbf16, #tpu.memory_space<vmem>>, vector<96x40xbf16>
    %cst_34 = arith.constant dense<0.000000e+00> : vector<96x384xf32>
    %32 = tpu.matmul %31, %30, %cst_34 {dimension_numbers = #tpu.dot_dimension_numbers<[1], [0], [0], [1], [0, 0, 1, 1], [], []>} : vector<96x40xbf16>, vector<40x384xbf16>, vector<96x384xf32> -> vector<96x384xf32>
    %33 = arith.addf %28, %32 : vector<96x384xf32>
    %c0_35 = arith.constant 0 : index
    %c0_36 = arith.constant 0 : index
    %c0_37 = arith.constant 0 : index
    %c49 = arith.constant 49 : index
    %34 = vector.load %arg2[%c0_35, %c0_36, %c0_37, %c49] : memref<1x1x40x512xbf16, #tpu.memory_space<vmem>>, vector<1x1x40x384xbf16>
    %35 = vector.shape_cast %34 : vector<1x1x40x384xbf16> to vector<40x384xbf16>
    %c672 = arith.constant 672 : index
    %c0_38 = arith.constant 0 : index
    %36 = vector.load %arg3[%c672, %c0_38] : memref<864x40xbf16, #tpu.memory_space<vmem>>, vector<96x40xbf16>
    %cst_39 = arith.constant dense<0.000000e+00> : vector<96x384xf32>
    %37 = tpu.matmul %36, %35, %cst_39 {dimension_numbers = #tpu.dot_dimension_numbers<[1], [0], [0], [1], [0, 0, 1, 1], [], []>} : vector<96x40xbf16>, vector<40x384xbf16>, vector<96x384xf32> -> vector<96x384xf32>
    %38 = arith.addf %33, %37 : vector<96x384xf32>
    %c0_40 = arith.constant 0 : index
    %c0_41 = arith.constant 0 : index
    %c0_42 = arith.constant 0 : index
    %c50 = arith.constant 50 : index
    %39 = vector.load %arg2[%c0_40, %c0_41, %c0_42, %c50] : memref<1x1x40x512xbf16, #tpu.memory_space<vmem>>, vector<1x1x40x384xbf16>
    %40 = vector.shape_cast %39 : vector<1x1x40x384xbf16> to vector<40x384xbf16>
    %c768 = arith.constant 768 : index
    %c0_43 = arith.constant 0 : index
    %41 = vector.load %arg3[%c768, %c0_43] : memref<864x40xbf16, #tpu.memory_space<vmem>>, vector<96x40xbf16>
    %cst_44 = arith.constant dense<0.000000e+00> : vector<96x384xf32>
    %42 = tpu.matmul %41, %40, %cst_44 {dimension_numbers = #tpu.dot_dimension_numbers<[1], [0], [0], [1], [0, 0, 1, 1], [], []>} : vector<96x40xbf16>, vector<40x384xbf16>, vector<96x384xf32> -> vector<96x384xf32>
    %43 = arith.addf %38, %42 : vector<96x384xf32>
    %44 = vector.extract_strided_slice %43 {offsets = [0, 0], sizes = [32, 384], strides = [1, 1]} : vector<96x384xf32> to vector<32x384xf32>
    %45 = arith.negf %44 : vector<32x384xf32>
    %46 = math.exp %45 : vector<32x384xf32>
    %cst_45 = arith.constant 1.000000e+00 : f32
    %47 = vector.broadcast %cst_45 : f32 to vector<32x384xf32>
    %48 = arith.addf %47, %46 : vector<32x384xf32>
    %49 = arith.divf %47, %48 : vector<32x384xf32>
    %50 = vector.extract_strided_slice %43 {offsets = [32, 0], sizes = [32, 384], strides = [1, 1]} : vector<96x384xf32> to vector<32x384xf32>
    %51 = vector.extract_strided_slice %43 {offsets = [64, 0], sizes = [32, 384], strides = [1, 1]} : vector<96x384xf32> to vector<32x384xf32>
    %52 = arith.mulf %49, %51 : vector<32x384xf32>
    %53 = arith.addf %50, %52 : vector<32x384xf32>
    %54 = math.tanh %53 : vector<32x384xf32>
    %c0_46 = arith.constant 0 : index
    %c0_47 = arith.constant 0 : index
    %c0_48 = arith.constant 0 : index
    %55 = vector.load %arg4[%c0_46, %c0_47, %c0_48] : memref<1x32x384xf32, #tpu.memory_space<vmem>>, vector<1x32x384xf32>
    %56 = vector.shape_cast %55 : vector<1x32x384xf32> to vector<32x384xf32>
    %57 = arith.subf %56, %54 : vector<32x384xf32>
    %58 = arith.mulf %49, %57 : vector<32x384xf32>
    %59 = arith.addf %54, %58 : vector<32x384xf32>
    %c0_49 = arith.constant 0 : index
    %c0_50 = arith.constant 0 : index
    %c0_51 = arith.constant 0 : index
    %60 = vector.load %arg5[%c0_49, %c0_50, %c0_51] : memref<1x32x384xf32, #tpu.memory_space<vmem>>, vector<1x32x384xf32>
    %61 = vector.shape_cast %60 : vector<1x32x384xf32> to vector<32x384xf32>
    %62 = vector.shape_cast %59 : vector<32x384xf32> to vector<1x32x384xf32>
    tpu.vector_store %arg5[%c0_49, %c0_50, %c0_51], %62 {strides = array<i32>} : memref<1x32x384xf32, #tpu.memory_space<vmem>>, vector<1x32x384xf32>,
    return
  }
  func.func @transform_0(%arg0: i32, %arg1: i32) -> (i32, i32, i32, i32) {
    %c0_i32 = arith.constant 0 : i32
    %c0_i32_0 = arith.constant 0 : i32
    %c0_i32_1 = arith.constant 0 : i32
    return %arg0, %arg1, %c0_i32, %c0_i32_0 : i32, i32, i32, i32
  }
  func.func @transform_1(%arg0: i32, %arg1: i32) -> (i32, i32) {
    %c0_i32 = arith.constant 0 : i32
    %c0_i32_0 = arith.constant 0 : i32
    %c0_i32_1 = arith.constant 0 : i32
    return %c0_i32, %c0_i32_0 : i32, i32
  }
  func.func @transform_2(%arg0: i32, %arg1: i32) -> (i32, i32, i32) {
    %c0_i32 = arith.constant 0 : i32
    %c0_i32_0 = arith.constant 0 : i32
    return %arg0, %c0_i32, %arg1 : i32, i32, i32
  }
  func.func @transform_3(%arg0: i32, %arg1: i32) -> (i32, i32, i32) {
    %c0_i32 = arith.constant 0 : i32
    %c0_i32_0 = arith.constant 0 : i32
    return %arg0, %c0_i32, %arg1 : i32, i32, i32
  }
}

</mosaic_0001>

<bundles_post_ra>
// kernel: conv_mgu_cell.1
= control target key start
LH: loop header
LB: loop body
LE: loop exit
PB: predicated region body
PF: predicated region fallthrough
CT: control target
= control target key end

     0   :  { %s4377_s12 = smov 0   ;;  %s4379_s13 = smov 0   ;;  %s5638_s0 = inlined_call_operand.vmem [shape: bf16[2,1,40,512], index: 0, kind: input, shape index: {}]   ;;  %s5639_s1 = inlined_call_operand.vmem [shape: bf16[864,40], index: 1, kind: input, shape index: {}]   ;;  %s5640_s2 = inlined_call_operand.vmem [shape: f32[2,32,384], index: 2, kind: input, shape index: {}]   ;;  %s5641_s3 = inlined_call_operand.vmem [shape: f32[2,32,384], index: 3, kind: output, shape index: {}]  }
   0x1   :  { %s4381_s14 = smov 0  }
   0x2 LB: > { %s25_s15 = sadd.s32 1, %s4342_s13  ;;  %p3388_p0 = scmp.ge.s32.totalorder %s4346_s14, 1  ;;  %s4346_s14 = sphi %s4381_s14, %s13_s14   ;;  %s4342_s13 = sphi %s4379_s13, %s5652_s13   ;;  %s4338_s12 = sphi %s4377_s12, %s5651_s12  }
   0x3   : > { %p27_p1 = scmp.ge.s32.totalorder %s25_s15, 2  ;;  %p174_p2 = scmp.lt.s32.totalorder %s4346_s14, 3 }
   0x5   : > { %s5654_s15 = smov (%p27_p1, %s25_s15), 0  ;;  %p175_p3 = pnand %p3388_p0, %p174_p2 }
   0x7   : > { %178 = sbr.rel (%p175_p3) target bundleno = 737 (0x2e1), region = 32 }
   0xe   : > { %p215_p4 = scmp.lt.s32.totalorder %s4338_s12, 1  ;;  %s4348_s20 = smov 127   ;;  %v5643_v8 = vmov 0   ;;  %vm385_vm0 = vcmask 1039360   ;;  %vm941_vm1 = vcmask 1031168   ;;  %vm420_vm2 = vcmask 1043456  }
   0xf   : > { %s4349_s21 = smov 126   ;;  %462 = vmatprep.mubr.bf16.mxu1 %v5643_v8  ;;  %1016 = vmatprep.mubr.bf16.mxu0 %v5643_v8  ;;  %s4351_s22 = smov 104   ;;  %v4619_v39 = vld [vmem:[%s5639_s1 + $0x30] sm:$0xff]   ;;  %vm401_vm3 = vcmask 326656   ;;  %v4651_v48 = vld [vmem:[%s5639_s1 + $0x38] sm:$0xff]   ;;  %v4656_v49 = vld [vmem:[%s5639_s1 + $0x60] sm:$0xff]  }
  0x10   : > { %s5656_s12 = smov (!%p215_p4, %s4338_s12), 1  ;;  %s4352_s23 = smov 103   ;;  %vm1260_vm4 = vcmask 850944   ;;  %v4681_v56 = vld [vmem:[%s5639_s1 + $0x40] sm:$0xff]   ;;  %v4688_v58 = vld [vmem:[%s5639_s1 + $0x68] sm:$0xff]   ;;  %vm1579_vm5 = vcmask 842752  }
  0x11   : > { %s4144_s16 = smul.u32 80, %s5656_s12  ;;  %s4353_s24 = smov 102   ;;  %vm1898_vm6 = vcmask 834560   ;;  %vm2217_vm7 = vcmask 654336   ;;  %vm2536_vm8 = vcmask 646144   ;;  %vm2855_vm9 = vcmask 637952  }
  0x12   : > { %s4354_s25 = smov 80   ;;  %s4355_s26 = smov 79  }
  0x13   : > { %s4401_s19 = scalar_lea.vmem %s5638_s0, %s4144_s16  ;;  %s4356_s18 = smov 78  }
  0x14   : > { %v4404_v0 = vld [vmem:[%s4401_s19 + $0x4] ss:$16 sps:$4 sm:$0xff]   ;;  %v4407_v1 = vld [vmem:[%s4401_s19] ss:$16 sps:$4 sm:$0xff]   ;;  %v4412_v2 = vld [vmem:[%s4401_s19 + $0x8] ss:$16 sps:$4 sm:$0xff]  }
  0x15   : > { %363 = vrot.lane.b32.xlu0 %v4404_v0, %s4348_s20  ;;  %361 = vrot.lane.b32.xlu1 %v4407_v1, %s4348_s20  ;;  %v4417_v3 = vld [vmem:[%s4401_s19 + $0x24] ss:$16 sps:$4 sm:$0xff]   ;;  %v4424_v4 = vld [vmem:[%s4401_s19 + $0x28] ss:$16 sps:$4 sm:$0xff]  }
  0x16   : > { %v4431_v5 = vld [vmem:[%s4401_s19 + $0x20] ss:$16 sps:$4 sm:$0xff]   ;;  %v276_v7 = vld [vmem:[%s4401_s19 + $0x48] sm:$0xff] }
  0x17   : > { %v275_v6 = vld [vmem:[%s4401_s19 + $0x40] sm:$0xff]  ;;  %v4453_v11 = vcombine.low %v276_v7, %v276_v7  ;;  %v4476_v12 = vld [vmem:[%s4401_s19 + $0xc] ss:$16 sps:$4 sm:$0xff]   ;;  %v4493_v14 = vcombine.high %v276_v7, %v276_v7 }
  0x18   : > { %v4444_v9 = vcombine.low %v275_v6, %v275_v6  ;;  %v4449_v10 = vcombine.high %v275_v6, %v275_v6  ;;  %v4489_v13 = vld [vmem:[%s4401_s19 + $0x2c] ss:$16 sps:$4 sm:$0xff]  }
  0x19   : > { %365 = vrot.lane.b32.xlu0 %v4412_v2, %s4348_s20  ;;  %919 = vrot.lane.b32.xlu1 %v4404_v0, %s4349_s21  ;;  %v4710_v7 = vld [vmem:[%s5639_s1 + $0x48] sm:$0xff]  }
  0x1d   : > { %921 = vrot.lane.b32.xlu0 %v4412_v2, %s4349_s21  ;;  %371 = vrot.lane.b32.xlu1 %v4417_v3, %s4348_s20 }
  0x21   : > { %373 = vrot.lane.b32.xlu0 %v4424_v4, %s4348_s20  ;;  %917 = vrot.lane.b32.xlu1 %v4407_v1, %s4349_s21 }
  0x25   : > { %369 = vrot.lane.b32.xlu0 %v4431_v5, %s4348_s20  ;;  %927 = vrot.lane.b32.xlu1 %v4417_v3, %s4349_s21 }
  0x29   : > { %929 = vrot.lane.b32.xlu0 %v4424_v4, %s4349_s21  ;;  %377 = vrot.lane.b32.xlu1 %v4444_v9, %s4348_s20 }
  0x2d   : > { %379 = vrot.lane.b32.xlu0 %v4449_v10, %s4348_s20  ;;  %381 = vrot.lane.b32.xlu1 %v4453_v11, %s4348_s20 }
  0x31   : > { %925 = vrot.lane.b32.xlu0 %v4431_v5, %s4349_s21  ;;  %933 = vrot.lane.b32.xlu1 %v4444_v9, %s4349_s21 }
  0x35   : > { %935 = vrot.lane.b32.xlu0 %v4449_v10, %s4349_s21  ;;  %937 = vrot.lane.b32.xlu1 %v4453_v11, %s4349_s21 }
  0x39   : > { %1238 = vrot.lane.b32.xlu0 %v4404_v0, %s4351_s22  ;;  %1240 = vrot.lane.b32.xlu1 %v4412_v2, %s4351_s22 }
  0x3d   : > { %1236 = vrot.lane.b32.xlu0 %v4407_v1, %s4351_s22  ;;  %1246 = vrot.lane.b32.xlu1 %v4417_v3, %s4351_s22 }
  0x41   : > { %1248 = vrot.lane.b32.xlu0 %v4424_v4, %s4351_s22  ;;  %367 = vrot.lane.b32.xlu1 %v4476_v12, %s4348_s20 }
  0x45   : > { %1244 = vrot.lane.b32.xlu0 %v4431_v5, %s4351_s22  ;;  %1252 = vrot.lane.b32.xlu1 %v4444_v9, %s4351_s22 }
  0x49   : > { %1254 = vrot.lane.b32.xlu0 %v4449_v10, %s4351_s22  ;;  %1256 = vrot.lane.b32.xlu1 %v4453_v11, %s4351_s22 }
  0x4d   : > { %375 = vrot.lane.b32.xlu0 %v4489_v13, %s4348_s20  ;;  %383 = vrot.lane.b32.xlu1 %v4493_v14, %s4348_s20 }
  0x51   : > { %1557 = vrot.lane.b32.xlu0 %v4404_v0, %s4352_s23  ;;  %1559 = vrot.lane.b32.xlu1 %v4412_v2, %s4352_s23 }
  0x55   : > { %1555 = vrot.lane.b32.xlu0 %v4407_v1, %s4352_s23  ;;  %1565 = vrot.lane.b32.xlu1 %v4417_v3, %s4352_s23 }
  0x59   : > { %1567 = vrot.lane.b32.xlu0 %v4424_v4, %s4352_s23  ;;  %1563 = vrot.lane.b32.xlu1 %v4431_v5, %s4352_s23 }
  0x5d   : > { %1571 = vrot.lane.b32.xlu0 %v4444_v9, %s4352_s23  ;;  %1573 = vrot.lane.b32.xlu1 %v4449_v10, %s4352_s23 }
  0x61   : > { %1575 = vrot.lane.b32.xlu0 %v4453_v11, %s4352_s23  ;;  %1876 = vrot.lane.b32.xlu1 %v4404_v0, %s4353_s24 }
  0x65   : > { %1878 = vrot.lane.b32.xlu0 %v4412_v2, %s4353_s24  ;;  %1874 = vrot.lane.b32.xlu1 %v4407_v1, %s4353_s24 }
  0x69   : > { %1884 = vrot.lane.b32.xlu0 %v4417_v3, %s4353_s24  ;;  %1886 = vrot.lane.b32.xlu1 %v4424_v4, %s4353_s24 }
  0x6d   : > { %1882 = vrot.lane.b32.xlu0 %v4431_v5, %s4353_s24  ;;  %1890 = vrot.lane.b32.xlu1 %v4444_v9, %s4353_s24 }
  0x71   : > { %1892 = vrot.lane.b32.xlu0 %v4449_v10, %s4353_s24  ;;  %1894 = vrot.lane.b32.xlu1 %v4453_v11, %s4353_s24 }
  0x75   : > { %923 = vrot.lane.b32.xlu0 %v4476_v12, %s4349_s21  ;;  %931 = vrot.lane.b32.xlu1 %v4489_v13, %s4349_s21 }
  0x79   : > { %939 = vrot.lane.b32.xlu0 %v4493_v14, %s4349_s21  ;;  %1242 = vrot.lane.b32.xlu1 %v4476_v12, %s4351_s22 }
  0x7d   : > { %1250 = vrot.lane.b32.xlu0 %v4489_v13, %s4351_s22  ;;  %1258 = vrot.lane.b32.xlu1 %v4493_v14, %s4351_s22  ;;  %s4145_s22 = smul.u32 96, %s5656_s12 }
  0x7f   : > { %s5596_s28 = scalar_lea.vmem %s5641_s3, %s4145_s22 }
  0x81   : > { %2195 = vrot.lane.b32.xlu0 %v4404_v0, %s4354_s25  ;;  %2197 = vrot.lane.b32.xlu1 %v4412_v2, %s4354_s25 }
  0x85   : > { %2193 = vrot.lane.b32.xlu0 %v4407_v1, %s4354_s25  ;;  %2203 = vrot.lane.b32.xlu1 %v4417_v3, %s4354_s25 }
  0x87   : > { %v364_v15 = vpop.permute.xlu0 %363  ;;  %v362_v16 = vpop.permute.xlu1 %361 }
  0x88   : > { %v386_v20 = vsel %vm385_vm0, %v362_v16, %v364_v15  ;;  %v4717_v16 = vld [vmem:[%s5639_s1 + $0x70] sm:$0xff]  }
  0x89   : > { %2205 = vrot.lane.b32.xlu0 %v4424_v4, %s4354_s25  ;;  %2201 = vrot.lane.b32.xlu1 %v4431_v5, %s4354_s25 }
  0x8b   : > { %v4559_v17 = vpop.permute.xlu0 %365  ;;  %v920_v18 = vpop.permute.xlu1 %919 }
  0x8c   : > { %v387_v19 = vsel %vm385_vm0, %v364_v15, %v4559_v17 }
  0x8d   : > { %430 = vmatprep.subr.bf16.mxu1 %v387_v19  ;;  %2209 = vrot.lane.b32.xlu0 %v4444_v9, %s4354_s25 }
  0x8e   : > { %2211 = vrot.lane.b32.xlu1 %v4449_v10, %s4354_s25  ;;  %431 = vmatpush1.bf16.msra.mxu1 %v386_v20 }
  0x8f   : > { %v4568_v21 = vpop.permute.xlu0 %921  ;;  %v372_v22 = vpop.permute.xlu1 %371 }
  0x90   : > { %v4572_v23 = vsel %vm941_vm1, %v920_v18, %v4568_v21 }
  0x91   : > { %2213 = vrot.lane.b32.xlu0 %v4453_v11, %s4354_s25  ;;  %984 = vmatprep.subr.bf16.mxu0 %v4572_v23 }
  0x92   : > { %1561 = vrot.lane.b32.xlu1 %v4476_v12, %s4352_s23 }
  0x93   : > { %v4579_v24 = vpop.permute.xlu0 %373  ;;  %v918_v25 = vpop.permute.xlu1 %917 }
  0x94   : > { %v390_v26 = vsel %vm385_vm0, %v372_v22, %v4579_v24  ;;  %v4586_v27 = vsel %vm941_vm1, %v918_v25, %v920_v18 }
  0x95   : > { %1569 = vrot.lane.b32.xlu0 %v4489_v13, %s4352_s23  ;;  %432 = vmatprep.subr.bf16.mxu1 %v390_v26 }
  0x96   : > { %1577 = vrot.lane.b32.xlu1 %v4493_v14, %s4352_s23  ;;  %985 = vmatpush1.bf16.msra.mxu0 %v4586_v27 }
  0x97   : > { %v370_v28 = vpop.permute.xlu0 %369  ;;  %v928_v29 = vpop.permute.xlu1 %927 }
  0x98   : > { %v389_v30 = vsel %vm385_vm0, %v370_v28, %v372_v22 }
  0x99   : > { %433 = vmatpush1.bf16.msra.mxu1 %v389_v30  ;;  %1880 = vrot.lane.b32.xlu0 %v4476_v12, %s4353_s24 }
  0x9a   : > { %1888 = vrot.lane.b32.xlu1 %v4489_v13, %s4353_s24 }
  0x9b   : > { %v4596_v31 = vpop.permute.xlu0 %929  ;;  %v378_v32 = vpop.permute.xlu1 %377 }
  0x9c   : > { %v4600_v33 = vsel %vm941_vm1, %v928_v29, %v4596_v31 }
  0x9d   : > { %986 = vmatprep.subr.bf16.mxu0 %v4600_v33  ;;  %1896 = vrot.lane.b32.xlu0 %v4493_v14, %s4353_s24 }
  0x9e   : > { %2514 = vrot.lane.b32.xlu1 %v4404_v0, %s4355_s26 }
  0x9f   : > { %v380_v34 = vpop.permute.xlu0 %379  ;;  %v4608_v36 = vpop.permute.xlu1 %381 }
  0xa0   : > { %v392_v35 = vsel %vm385_vm0, %v378_v32, %v380_v34  ;;  %v393_v37 = vsel %vm385_vm0, %v380_v34, %v4608_v36 }
  0xa1   : > { %v422_v38 = vsel %vm420_vm2, %v392_v35, 0  ;;  %2516 = vrot.lane.b32.xlu0 %v4412_v2, %s4355_s26  ;;  %3410 = vmatprep.subr.msk.bf16.mxu1 %vm420_vm2, %v393_v37  ;;  %v4204_v37 = vld [vmem:[%s5639_s1 + $0x58] sm:$0xff]  }
  0xa2   : > { %2512 = vrot.lane.b32.xlu1 %v4407_v1, %s4355_s26  ;;  %435 = vmatpush1.bf16.msra.mxu1 %v422_v38 }
  0xa3   : > { %v926_v40 = vpop.permute.xlu0 %925  ;;  %v934_v41 = vpop.permute.xlu1 %933 }
  0xa4   : > { %v4624_v42 = vsel %vm941_vm1, %v926_v40, %v928_v29  ;;  %v4743_v29 = vld [vmem:[%s5639_s1 + $0x50] sm:$0xff]   ;;  %v4779_v40 = vld [vmem:[%s5639_s1 + $0x80] sm:$0xff]  }
  0xa5   : > { %987 = vmatpush1.bf16.msra.mxu0 %v4624_v42  ;;  %2522 = vrot.lane.b32.xlu0 %v4417_v3, %s4355_s26 }
  0xa6   : > { %3411 = vmatmul.mubr.msk.bf16.vlgmr.msra.gmra.mrb[0].mxu1 %vm401_vm3, %v4619_v39  ;;  %2524 = vrot.lane.b32.xlu1 %v4424_v4, %s4355_s26 }
  0xa7   : > { %v936_v43 = vpop.permute.xlu0 %935  ;;  %472 = vmatprep.mubr.bf16.mxu1 %v5643_v8  ;;  %v4635_v45 = vpop.permute.xlu1 %937 }
  0xa8   : > { %v948_v44 = vsel %vm941_vm1, %v934_v41, %v936_v43  ;;  %v4639_v46 = vsel %vm941_vm1, %v936_v43, %v4635_v45 }
  0xa9   : > { %v4642_v47 = vsel %vm420_vm2, %v948_v44, 0  ;;  %2520 = vrot.lane.b32.xlu0 %v4431_v5, %s4355_s26  ;;  %3457 = vmatprep.subr.msk.bf16.mxu0 %vm420_vm2, %v4639_v46 }
  0xaa   : > { %2528 = vrot.lane.b32.xlu1 %v4444_v9, %s4355_s26  ;;  %989 = vmatpush1.bf16.msra.mxu0 %v4642_v47 }
  0xab   : > { %v1239_v50 = vpop.permute.xlu0 %1238  ;;  %v4661_v51 = vpop.permute.xlu1 %1240 }
  0xac   : > { %v1262_v52 = vsel %vm1260_vm4, %v1239_v50, %v4661_v51 }
  0xad   : > { %2530 = vrot.lane.b32.xlu0 %v4449_v10, %s4355_s26  ;;  %3458 = vmatmul.mubr.msk.bf16.vlgmr.msra.gmra.mrb[0].mxu0 %vm401_vm3, %v4656_v49 }
  0xae   : > { %3412 = vmatmul.mubr.msk.bf16.gmra.mrb[4].mxu1 %vm401_vm3, %v4651_v48  ;;  %1303 = vmatprep.subr.bf16.mxu0 %v1262_v52 }
  0xaf   : > { %v1237_v53 = vpop.permute.xlu0 %1236  ;;  %482 = vmatprep.mubr.bf16.mxu1 %v5643_v8  ;;  %v1247_v55 = vpop.permute.xlu1 %1246  ;;  %1026 = vmatprep.mubr.bf16.mxu0 %v5643_v8 }
  0xb0   : > { %v1261_v54 = vsel %vm1260_vm4, %v1237_v53, %v1239_v50  ;;  %2532 = vrot.lane.b32.xlu1 %v4453_v11, %s4355_s26 }
  0xb1   : > { %1304 = vmatpush1.bf16.msra.mxu0 %v1261_v54  ;;  %2199 = vrot.lane.b32.xlu0 %v4476_v12, %s4354_s25 }
  0xb3   : > { %v4683_v57 = vpop.permute.xlu0 %1248  ;;  %v368_v59 = vpop.permute.xlu1 %367 }
  0xb4   : > { %v1265_v60 = vsel %vm1260_vm4, %v1247_v55, %v4683_v57  ;;  %2207 = vrot.lane.b32.xlu1 %v4489_v13, %s4354_s25  ;;  %v388_v61 = vsel %vm385_vm0, %v4559_v17, %v368_v59 }
  0xb5   : > { %1305 = vmatprep.subr.bf16.mxu0 %v1265_v60  ;;  %2215 = vrot.lane.b32.xlu0 %v4493_v14, %s4354_s25  ;;  %s5561_s25 = scalar_lea.vmem %s5640_s2, %s4145_s22 }
  0xb6   : > { %3413 = vmatmul.mubr.msk.bf16.gmra.mrb[8].mxu1 %vm401_vm3, %v4681_v56  ;;  %3679 = vmatprep.subr.bf16.mxu1 %v388_v61 }
  0xb7   : > { %3459 = vmatmul.mubr.msk.bf16.gmra.mrb[4].mxu0 %vm401_vm3, %v4688_v58  ;;  %3680 = vmatpush3.bf16.msra.mxu1 %v388_v61  ;;  %v1245_v62 = vpop.permute.xlu0 %1244  ;;  %v1253_v6 = vpop.permute.xlu1 %1252 }
  0xb8   : > { %v1264_v63 = vsel %vm1260_vm4, %v1245_v62, %v1247_v55  ;;  %492 = vmatprep.mubr.bf16.mxu1 %v5643_v8  ;;  %1036 = vmatprep.mubr.bf16.mxu0 %v5643_v8  ;;  %v4835_v55 = vld [vmem:[%s5639_s1 + $0x98] sm:$0xff]  }
  0xb9   : > { %1306 = vmatpush1.bf16.msra.mxu0 %v1264_v63  ;;  %2518 = vrot.lane.b32.xlu1 %v4476_v12, %s4355_s26 }
  0xba   : > { %2526 = vrot.lane.b32.xlu0 %v4489_v13, %s4355_s26 }
  0xbb   : > { %v1255_v15 = vpop.permute.xlu0 %1254  ;;  %v4720_v18 = vpop.permute.xlu1 %1256 }
  0xbc   : > { %v1267_v17 = vsel %vm1260_vm4, %v1253_v6, %v1255_v15  ;;  %v1268_v20 = vsel %vm1260_vm4, %v1255_v15, %v4720_v18  ;;  %v4882_v6 = vld [vmem:[%s5639_s1] sm:$0xff]   ;;  %v4889_v15 = vld [vmem:[%s5639_s1 + $0xa8] sm:$0xff]  }
  0xbd   : > { %v1295_v19 = vsel %vm420_vm2, %v1267_v17, 0  ;;  %2534 = vrot.lane.b32.xlu1 %v4493_v14, %s4355_s26  ;;  %3476 = vmatprep.subr.msk.bf16.mxu0 %vm420_vm2, %v1268_v20 }
  0xbe   : > { %3414 = vmatmul.mubr.msk.bf16.gmra.mrb[12].mxu1 %vm401_vm3, %v4710_v7  ;;  %1308 = vmatpush1.bf16.msra.mxu0 %v1295_v19  ;;  %v4212_v19 = vld [vmem:[%s4401_s19 + $0x28] ss:$16 sps:$4 sm:$0xff]  }
  0xbf   : > { %3460 = vmatmul.mubr.msk.bf16.gmra.mrb[8].mxu0 %vm401_vm3, %v4717_v16  ;;  %v376_v22 = vpop.permute.xlu0 %375  ;;  %502 = vmatprep.mubr.bf16.mxu1 %v5643_v8  ;;  %v384_v25 = vpop.permute.xlu1 %383 }
  0xc0   : > { %v391_v26 = vsel %vm385_vm0, %v4579_v24, %v376_v22  ;;  %1046 = vmatprep.mubr.bf16.mxu0 %v5643_v8  ;;  %v394_v28 = vsel %vm385_vm0, %v4608_v36, %v384_v25  ;;  %2833 = vrot.lane.b32.xlu0 %v4404_v0, %s4356_s18  ;;  %v4213_v25 = vld [vmem:[%s4401_s19 + $0x48] ss:$0 sps:$4 sm:$0xff]  }
  0xc1   : > { %3681 = vmatprep.subr.bf16.mxu1 %v391_v26  ;;  %2835 = vrot.lane.b32.xlu1 %v4412_v2, %s4356_s18  ;;  %v4751_v2 = vld [vmem:[%s5639_s1 + $0x78] sm:$0xff]   ;;  %v428_v34 = vsel %vm420_vm2, %v394_v28, 0 }
  0xc2   : > { %3682 = vmatpush3.bf16.msra.mxu1 %v391_v26  ;;  %v4908_v26 = vld [vmem:[%s5639_s1 + $0x8] sm:$0xff]  }
  0xc3   : > { %v1558_v24 = vpop.permute.xlu0 %1557  ;;  %4135 = vmatprep.subr.msk.bf16.mxu1 %vm420_vm2, %v394_v28  ;;  %v4753_v30 = vpop.permute.xlu1 %1559 }
  0xc4   : > { %v1581_v32 = vsel %vm1579_vm5, %v1558_v24, %v4753_v30  ;;  %2831 = vrot.lane.b32.xlu0 %v4407_v1, %s4356_s18 }
  0xc5   : > { %2841 = vrot.lane.b32.xlu1 %v4417_v3, %s4356_s18  ;;  %1622 = vmatprep.subr.bf16.mxu0 %v1581_v32  ;;  %v699_v32 = vsel %vm420_vm2, %v4213_v25, 0 }
  0xc6   : > { %3415 = vmatmul.mubr.msk.bf16.gmra.mrb[16].mxu1 %vm401_vm3, %v4743_v29 }
  0xc7   : > { %3461 = vmatmul.mubr.msk.bf16.gmra.mrb[12].mxu0 %vm401_vm3, %v4751_v2  ;;  %3684 = vmatpush3.bf16.msra.mxu1 %v428_v34  ;;  %v1556_v35 = vpop.permute.xlu0 %1555  ;;  %v1566_v36 = vpop.permute.xlu1 %1565 }
  0xc8   : > { %512 = vmatprep.mubr.bf16.mxu1 %v5643_v8  ;;  %1056 = vmatprep.mubr.bf16.mxu0 %v5643_v8 }
  0xc9   : > { %701 = vmatprep.subr.bf16.mxu1 %v4404_v0  ;;  %2839 = vrot.lane.b32.xlu1 %v4431_v5, %s4356_s18 }
  0xca   : > { %2843 = vrot.lane.b32.xlu0 %v4424_v4, %s4356_s18  ;;  %v4800_v4 = vld [vmem:[%s5639_s1 + $0x90] sm:$0xff]  }
  0xcb   : > { %v4774_v38 = vpop.permute.xlu0 %1567  ;;  %v1564_v41 = vpop.permute.xlu1 %1563 }
  0xcd   : > { %2849 = vrot.lane.b32.xlu1 %v4449_v10, %s4356_s18 }
  0xce   : > { %3416 = vmatmul.mubr.msk.bf16.gmra.mrb[20].mxu1 %vm401_vm3, %v4204_v37  ;;  %2847 = vrot.lane.b32.xlu0 %v4444_v9, %s4356_s18 }
  0xcf   : > { %3462 = vmatmul.mubr.msk.bf16.gmra.mrb[16].mxu0 %vm401_vm3, %v4779_v40  ;;  %v1572_v0 = vpop.permute.xlu0 %1571  ;;  %3685 = vmatprep.mubr.msk.bf16.mxu1 %vm401_vm3, %v4619_v39  ;;  %v1574_v43 = vpop.permute.xlu1 %1573  ;;  %v1580_v39 = vsel %vm1579_vm5, %v1556_v35, %v1558_v24 }
  0xd0   : > { %1335 = vmatprep.mubr.bf16.mxu0 %v5643_v8 }
  0xd1   : > { %2837 = vrot.lane.b32.xlu1 %v4476_v12, %s4356_s18  ;;  %v1584_v12 = vsel %vm1579_vm5, %v1566_v36, %v4774_v38 }
  0xd2   : > { %2851 = vrot.lane.b32.xlu0 %v4453_v11, %s4356_s18  ;;  %v1586_v11 = vsel %vm1579_vm5, %v1572_v0, %v1574_v43 }
  0xd3   : > { %v4795_v44 = vpop.permute.xlu0 %1575  ;;  %v4802_v50 = vpop.permute.xlu1 %1876 }
  0xd5   : > { %2853 = vrot.lane.b32.xlu1 %v4493_v14, %s4356_s18  ;;  %v1583_v14 = vsel %vm1579_vm5, %v1564_v41, %v1566_v36  ;;  %v4935_v36 = vld [vmem:[%s5639_s1 + $0x10] sm:$0xff]   ;;  %v4942_v41 = vld [vmem:[%s5639_s1 + $0xb8] sm:$0xff]  }
  0xd6   : > { %3686 = vmatmul.mubr.msk.bf16.vlgmr.msra.gmra.mrb[24].mxu1 %vm401_vm3, %v4651_v48  ;;  %v1587_v48 = vsel %vm1579_vm5, %v1574_v43, %v4795_v44  ;;  %2845 = vrot.lane.b32.xlu0 %v4489_v13, %s4356_s18  ;;  %v4209_v13 = vld [vmem:[%s4401_s19 + $0x8] ss:$16 sps:$4 sm:$0xff]  }
  0xd7   : > { %3477 = vmatmul.mubr.msk.bf16.vlgmr.msra.gmra.mrb[0].mxu0 %vm401_vm3, %v4800_v4  ;;  %v4815_v52 = vpop.permute.xlu0 %1878  ;;  %3689 = vmatprep.mubr.msk.bf16.mxu1 %vm401_vm3, %v4681_v56  ;;  %v4819_v53 = vpop.permute.xlu1 %1874  ;;  %v1614_v56 = vsel %vm420_vm2, %v1586_v11, 0 }
  0xd8   : > { %1345 = vmatprep.mubr.bf16.mxu0 %v5643_v8  ;;  %1623 = vmatpush1.bf16.msra.mxu0 %v1580_v39  ;;  %v1900_v59 = vsel %vm1898_vm6, %v4802_v50, %v4815_v52  ;;  %v4959_v39 = vld [vmem:[%s5639_s1 + $0x18] sm:$0xff]  }
  0xd9   : > { %702 = vmatpush1.bf16.msra.mxu1 %v4407_v1  ;;  %1624 = vmatprep.subr.bf16.mxu0 %v1584_v12 }
  0xda   : > { %703 = vmatprep.subr.bf16.mxu1 %v4417_v3  ;;  %v693_v3 = vsel %vm420_vm2, %v4444_v9, 0 }
  0xdb   : > { %v4830_v54 = vpop.permute.xlu0 %1884  ;;  %v4837_v1 = vpop.permute.xlu1 %1886 }
  0xdc   : > { %1625 = vmatpush1.bf16.msra.mxu0 %v1583_v14  ;;  %v4966_v14 = vld [vmem:[%s5639_s1 + $0xc0] sm:$0xff]  }
  0xdd   : > { %704 = vmatpush1.bf16.msra.mxu1 %v4431_v5  ;;  %3495 = vmatprep.subr.msk.bf16.mxu0 %vm420_vm2, %v1587_v48  ;;  %v1899_v48 = vsel %vm1898_vm6, %v4819_v53, %v4802_v50 }
  0xde   : > { %3690 = vmatmul.mubr.msk.bf16.gmra.mrb[28].mxu1 %vm401_vm3, %v4710_v7  ;;  %3438 = vmatprep.subr.msk.bf16.mxu1 %vm420_vm2, %v4449_v10  ;;  %v4866_v10 = vld [vmem:[%s5639_s1 + $0xa0] sm:$0xff]  }
  0xdf   : > { %3478 = vmatmul.mubr.msk.bf16.gmra.mrb[4].mxu0 %vm401_vm3, %v4835_v55  ;;  %v4854_v5 = vpop.permute.xlu0 %1882  ;;  %3693 = vmatprep.mubr.msk.bf16.mxu1 %vm401_vm3, %v4743_v29  ;;  %v4858_v60 = vpop.permute.xlu1 %1890  ;;  %v4915_v29 = vld [vmem:[%s5639_s1 + $0xb0] sm:$0xff]  }
  0xe0   : > { %1355 = vmatprep.mubr.bf16.mxu0 %v5643_v8  ;;  %1627 = vmatpush1.bf16.msra.mxu0 %v1614_v56  ;;  %v1903_v56 = vsel %vm1898_vm6, %v4830_v54, %v4837_v1  ;;  %v1902_v50 = vsel %vm1898_vm6, %v4854_v5, %v4830_v54 }
  0xe1   : > { %706 = vmatpush1.bf16.msra.mxu1 %v693_v3  ;;  %1941 = vmatprep.subr.bf16.mxu0 %v1900_v59 }
  0xe2   : > { %3697 = vmatprep.subr.bf16.mxu1 %v4209_v13 }
  0xe3   : > { %v4861_v9 = vpop.permute.xlu0 %1892  ;;  %v4868_v61 = vpop.permute.xlu1 %1894 }
  0xe4   : > { %v1905_v53 = vsel %vm1898_vm6, %v4858_v60, %v4861_v9  ;;  %v1906_v59 = vsel %vm1898_vm6, %v4861_v9, %v4868_v61 }
  0xe6   : > { %3694 = vmatmul.mubr.msk.bf16.gmra.mrb[32].mxu1 %vm401_vm3, %v4204_v37 }
  0xe7   : > { %3479 = vmatmul.mubr.msk.bf16.gmra.mrb[8].mxu0 %vm401_vm3, %v4866_v10  ;;  %v4873_v62 = vpop.permute.xlu0 %923  ;;  %733 = vmatprep.mubr.bf16.mxu1 %v5643_v8  ;;  %v4876_v63 = vpop.permute.xlu1 %931 }
  0xe8   : > { %1365 = vmatprep.mubr.bf16.mxu0 %v5643_v8 }
  0xeb   : > { %v4884_v7 = vpop.permute.xlu0 %939  ;;  %v4891_v17 = vpop.permute.xlu1 %1242 }
  0xee   : > { %3439 = vmatmul.mubr.msk.bf16.vlgmr.msra.gmra.mrb[0].mxu1 %vm401_vm3, %v4882_v6 }
  0xef   : > { %3698 = vmatpush3.bf16.msra.mxu1 %v4209_v13  ;;  %3480 = vmatmul.mubr.msk.bf16.gmra.mrb[12].mxu0 %vm401_vm3, %v4889_v15  ;;  %v4898_v20 = vpop.permute.xlu0 %1250  ;;  %v4900_v22 = vpop.permute.xlu1 %1258 }
  0xf0   : > { %3699 = vmatprep.subr.bf16.mxu1 %v4212_v19  ;;  %743 = vmatprep.mubr.bf16.mxu1 %v5643_v8 }
  0xf1   : > { %1375 = vmatprep.mubr.bf16.mxu0 %v5643_v8 }
  0xf3   : > { %3700 = vmatpush3.bf16.msra.mxu1 %v4212_v19  ;;  %v4910_v28 = vpop.permute.xlu0 %2195  ;;  %v4917_v24 = vpop.permute.xlu1 %2197  ;;  %v4220_v19 = vld [vmem:[%s5639_s1 + $0x20] sm:$0xff]  }
  0xf4   : > { %4136 = vmatprep.subr.msk.bf16.mxu1 %vm420_vm2, %v4213_v25  ;;  %v5001_v25 = vld [vmem:[%s5639_s1 + $0xc8] sm:$0xff]  }
  0xf6   : > { %3440 = vmatmul.mubr.msk.bf16.gmra.mrb[4].mxu1 %vm401_vm3, %v4908_v26 }
  0xf7   : > { %3702 = vmatpush3.bf16.msra.mxu1 %v699_v32  ;;  %3481 = vmatmul.mubr.msk.bf16.gmra.mrb[16].mxu0 %vm401_vm3, %v4915_v29  ;;  %v4925_v34 = vpop.permute.xlu0 %2193  ;;  %v4928_v35 = vpop.permute.xlu1 %2203  ;;  %v1933_v32 = vsel %vm420_vm2, %v1905_v53, 0  ;;  %v5033_v53 = vld [vmem:[%s5639_s1 + $0xd0] sm:$0xff]  }
  0xf8   : > { %3841 = vmatprep.subr.bf16.mxu1 %v4572_v23  ;;  %753 = vmatprep.mubr.bf16.mxu1 %v5643_v8 }
  0xf9   : > { %1385 = vmatprep.mubr.bf16.mxu0 %v5643_v8 }
  0xfb   : > { %v4937_v37 = vpop.permute.xlu0 %2205  ;;  %v4944_v0 = vpop.permute.xlu1 %2201 }
  0xfe   : > { %3441 = vmatmul.mubr.msk.bf16.gmra.mrb[8].mxu1 %vm401_vm3, %v4935_v36 }
  0xff   : > { %3482 = vmatmul.mubr.msk.bf16.gmra.mrb[20].mxu0 %vm401_vm3, %v4942_v41  ;;  %v4950_v23 = vpop.permute.xlu0 %2209  ;;  %763 = vmatprep.mubr.bf16.mxu1 %v5643_v8 }
 0x100   : > { %v4953_v43 = vpop.permute.xlu1 %2211  ;;  %1654 = vmatprep.mubr.bf16.mxu0 %v5643_v8 }
 0x103   : > { %v4961_v12 = vpop.permute.xlu0 %2213 }
 0x104   : > { %v4968_v11 = vpop.permute.xlu1 %1561 }
 0x106   : > { %3442 = vmatmul.mubr.msk.bf16.gmra.mrb[12].mxu1 %vm401_vm3, %v4959_v39 }
 0x107   : > { %3496 = vmatmul.mubr.msk.bf16.vlgmr.msra.gmra.mrb[0].mxu0 %vm401_vm3, %v4966_v14  ;;  %v4980_v3 = vpop.permute.xlu0 %1569  ;;  %773 = vmatprep.mubr.bf16.mxu1 %v5643_v8 }
 0x108   : > { %v4983_v13 = vpop.permute.xlu1 %1577  ;;  %1664 = vmatprep.mubr.bf16.mxu0 %v5643_v8  ;;  %1942 = vmatpush1.bf16.msra.mxu0 %v1899_v48  ;;  %v2219_v48 = vsel %vm2217_vm7, %v4910_v28, %v4917_v24 }
 0x109   : > { %1943 = vmatprep.subr.bf16.mxu0 %v1903_v56 }
 0x10b   : > { %v1881_v54 = vpop.permute.xlu0 %1880 }
 0x10c   : > { %1944 = vmatpush1.bf16.msra.mxu0 %v1902_v50  ;;  %v1889_v5 = vpop.permute.xlu1 %1888  ;;  %v5005_v60 = vsel %vm1898_vm6, %v4815_v52, %v1881_v54  ;;  %v4222_v50 = vld [vmem:[%s5639_s1 + $0x28] sm:$0xff]  }
 0x10d   : > { %3514 = vmatprep.subr.msk.bf16.mxu0 %vm420_vm2, %v1906_v59  ;;  %v5011_v9 = vsel %vm1898_vm6, %v4837_v1, %v1889_v5 }
 0x10e   : > { %3443 = vmatmul.mubr.msk.bf16.gmra.mrb[16].mxu1 %vm401_vm3, %v4220_v19 }
 0x10f   : > { %3497 = vmatmul.mubr.msk.bf16.gmra.mrb[4].mxu0 %vm401_vm3, %v5001_v25  ;;  %783 = vmatprep.mubr.bf16.mxu1 %v5643_v8  ;;  %v1897_v52 = vpop.permute.xlu0 %1896 }
 0x110   : > { %1674 = vmatprep.mubr.bf16.mxu0 %v5643_v8  ;;  %v5023_v56 = vsel %vm1898_vm6, %v4868_v61, %v1897_v52  ;;  %1946 = vmatpush1.bf16.msra.mxu0 %v1933_v32  ;;  %v5025_v1 = vpop.permute.xlu1 %2514  ;;  %v5052_v32 = vld [vmem:[%s5639_s1 + $0xd8] sm:$0xff]  }
 0x111   : > { %5646 = vst [vmem:[#allocation2_spill] sm:$0xff] %v5023_v56  ;;  %2260 = vmatprep.subr.bf16.mxu0 %v2219_v48 }
 0x113   : > { %v5035_v59 = vpop.permute.xlu0 %2516 }
 0x114   : > { %v5037_v54 = vpop.permute.xlu1 %2512 }
 0x116   : > { %3444 = vmatmul.mubr.msk.bf16.gmra.mrb[20].mxu1 %vm401_vm3, %v4222_v50 }
 0x117   : > { %3498 = vmatmul.mubr.msk.bf16.gmra.mrb[8].mxu0 %vm401_vm3, %v5033_v53  ;;  %3703 = vmatprep.mubr.msk.bf16.mxu1 %vm401_vm3, %v4882_v6  ;;  %v5044_v61 = vpop.permute.xlu0 %2522 }
 0x118   : > { %1684 = vmatprep.mubr.bf16.mxu0 %v5643_v8  ;;  %v5047_v5 = vpop.permute.xlu1 %2524 }
 0x11b   : > { %v5054_v48 = vpop.permute.xlu0 %2520 }
 0x11c   : > { %v5056_v52 = vpop.permute.xlu1 %2528 }
 0x11e   : > { %3704 = vmatmul.mubr.msk.bf16.vlgmr.msra.gmra.mrb[24].mxu1 %vm401_vm3, %v4908_v26 }
 0x11f   : > { %3844 = vmatpush1.bf16.msra.mxu1 %v4586_v27  ;;  %3499 = vmatmul.mubr.msk.bf16.gmra.mrb[12].mxu0 %vm401_vm3, %v5052_v32  ;;  %v5063_v6 = vpop.permute.xlu0 %2530  ;;  %v5075_v27 = vld [vmem:[%s5639_s1 + $0xe0] sm:$0xff]  }
 0x120   : > { %3842 = vmatprep.subr.bf16.mxu1 %v4600_v33  ;;  %3707 = vmatprep.mubr.msk.bf16.mxu1 %vm401_vm3, %v4935_v36 }
 0x121   : > { %1694 = vmatprep.mubr.bf16.mxu0 %v5643_v8 }
 0x122   : > { %v5069_v56 = vpop.permute.xlu1 %2532 }
 0x123   : > { %3845 = vmatpush1.bf16.msra.mxu1 %v4624_v42  ;;  %v2200_v26 = vpop.permute.xlu0 %2199  ;;  %v944_v42 = vsel %vm941_vm1, %v4568_v21, %v4873_v62 }
 0x124   : > { %3843 = vmatprep.subr.msk.bf16.mxu1 %vm420_vm2, %v4639_v46  ;;  %v5081_v33 = vsel %vm2217_vm7, %v4917_v24, %v2200_v26 }
 0x126   : > { %3708 = vmatmul.mubr.msk.bf16.gmra.mrb[28].mxu1 %vm401_vm3, %v4959_v39  ;;  %v2208_v36 = vpop.permute.xlu1 %2207  ;;  %v5104_v39 = vld [vmem:[%s5639_s1 + $0xe8] sm:$0xff]  }
 0x127   : > { %3846 = vmatpush1.bf16.msra.mxu1 %v4642_v47  ;;  %3500 = vmatmul.mubr.msk.bf16.gmra.mrb[16].mxu0 %vm401_vm3, %v5075_v27  ;;  %v2216_v8 = vpop.permute.xlu0 %2215  ;;  %v5093_v46 = vsel %vm2217_vm7, %v4937_v37, %v2208_v36  ;;  %v5647_v47 = vmov 0  }
 0x128   : > { %3715 = vmatprep.subr.bf16.mxu1 %v944_v42  ;;  %3711 = vmatprep.mubr.msk.bf16.mxu1 %vm401_vm3, %v4220_v19  ;;  %v5098_v24 = vsel %vm2217_vm7, %v4961_v12, %v2216_v8 }
 0x129   : > { %1704 = vmatprep.mubr.bf16.mxu0 %v5647_v47 }
 0x12b   : > { %v2519_v21 = vpop.permute.xlu1 %2518 }
 0x12c   : > { %v2527_v62 = vpop.permute.xlu0 %2526  ;;  %v5108_v26 = vsel %vm2536_vm8, %v5035_v59, %v2519_v21  ;;  %v4227_v21 = vld [vmem:[%s5639_s1 + $0x88] sm:$0xff]  }
 0x12d   : > { %v5112_v19 = vsel %vm2536_vm8, %v5047_v5, %v2527_v62  ;;  %v2218_v62 = vsel %vm2217_vm7, %v4925_v34, %v4910_v28  ;;  %v2221_v28 = vsel %vm2217_vm7, %v4944_v0, %v4928_v35  ;;  %v2225_v34 = vsel %vm2217_vm7, %v4953_v43, %v4961_v12  ;;  %v5294_v12 = vld [vmem:[%s5639_s1 + $0x130] sm:$0xff]  }
 0x12e   : > { %3712 = vmatmul.mubr.msk.bf16.gmra.mrb[32].mxu1 %vm401_vm3, %v4222_v50  ;;  %v5129_v50 = vld [vmem:[%s5639_s1 + $0xf0] sm:$0xff]   ;;  %v1266_v0 = vsel %vm1260_vm4, %v4683_v57, %v4898_v20  ;;  %v2544_v20 = vsel %vm2536_vm8, %v5063_v6, %v5069_v56 }
 0x12f   : > { %3501 = vmatmul.mubr.msk.bf16.gmra.mrb[20].mxu0 %vm401_vm3, %v5104_v39  ;;  %1066 = vmatprep.mubr.bf16.mxu1 %v5647_v47  ;;  %v2535_v8 = vpop.permute.xlu1 %2534 }
 0x130   : > { %1973 = vmatprep.mubr.bf16.mxu0 %v5647_v47  ;;  %v5121_v36 = vsel %vm2536_vm8, %v5069_v56, %v2535_v8  ;;  %v947_v8 = vsel %vm941_vm1, %v4596_v31, %v4876_v63  ;;  %v950_v31 = vsel %vm941_vm1, %v4635_v45, %v4884_v7  ;;  %v2224_v63 = vsel %vm2217_vm7, %v4950_v23, %v4953_v43 }
 0x131   : > { %5648 = vst [vmem:[#allocation3_spill] sm:$0xff] %v5121_v36  ;;  %v2222_v36 = vsel %vm2217_vm7, %v4928_v35, %v4937_v37  ;;  %v982_v35 = vsel %vm420_vm2, %v950_v31, 0  ;;  %v2252_v45 = vsel %vm420_vm2, %v2224_v63, 0  ;;  %v1263_v7 = vsel %vm1260_vm4, %v4661_v51, %v4891_v17  ;;  %v5184_v51 = vld [vmem:[%s5639_s1 + $0x100] sm:$0xff]  }
 0x132   : > { %v2538_v37 = vsel %vm2536_vm8, %v5025_v1, %v5035_v59  ;;  %v1269_v17 = vsel %vm1260_vm4, %v4720_v18, %v4900_v22  ;;  %v5215_v18 = vld [vmem:[%s5639_s1 + $0x110] sm:$0xff]   ;;  %v5275_v22 = vld [vmem:[%s5639_s1 + $0x128] sm:$0xff]   ;;  %v2834_v43 = vpop.permute.xlu0 %2833 }
 0x133   : > { %v1301_v57 = vsel %vm420_vm2, %v1269_v17, 0  ;;  %v5281_v23 = vpop.permute.xlu1 %2835 }
 0x136   : > { %3463 = vmatmul.mubr.msk.bf16.vlgmr.msra.gmra.mrb[20].mxu1 %vm401_vm3, %v4227_v21 }
 0x137   : > { %3716 = vmatpush3.bf16.msra.mxu1 %v944_v42  ;;  %3515 = vmatmul.mubr.msk.bf16.vlgmr.msra.gmra.mrb[0].mxu0 %vm401_vm3, %v5129_v50 }
 0x138   : > { %3717 = vmatprep.subr.bf16.mxu1 %v947_v8  ;;  %1983 = vmatprep.mubr.bf16.mxu0 %v5647_v47 }
 0x139   : > { %2261 = vmatpush1.bf16.msra.mxu0 %v2218_v62  ;;  %3721 = vmatprep.mubr.msk.bf16.mxu1 %vm401_vm3, %v4656_v49  ;;  %v5161_v49 = vld [vmem:[%s5639_s1 + $0xf8] sm:$0xff]  }
 0x13a   : > { %2262 = vmatprep.subr.bf16.mxu0 %v2222_v36 }
 0x13b   : > { %3718 = vmatpush3.bf16.msra.mxu1 %v947_v8 }
 0x13c   : > { %4137 = vmatprep.subr.msk.bf16.mxu1 %vm420_vm2, %v950_v31 }
 0x13d   : > { %2263 = vmatpush1.bf16.msra.mxu0 %v2221_v28  ;;  %v4245_v28 = vld [vmem:[%s5639_s1 + $0x178] sm:$0xff]  }
 0x13e   : > { %3533 = vmatprep.subr.msk.bf16.mxu0 %vm420_vm2, %v2225_v34 }
 0x13f   : > { %3720 = vmatpush3.bf16.msra.mxu1 %v982_v35  ;;  %3516 = vmatmul.mubr.msk.bf16.gmra.mrb[4].mxu0 %vm401_vm3, %v5161_v49 }
 0x140   : > { %3733 = vmatprep.subr.bf16.mxu1 %v1263_v7  ;;  %1993 = vmatprep.mubr.bf16.mxu0 %v5647_v47 }
 0x141   : > { %2265 = vmatpush1.bf16.msra.mxu0 %v2252_v45  ;;  %v4246_v45 = vld [vmem:[%s5639_s1 + $0x180] sm:$0xff]  }
 0x142   : > { %3722 = vmatmul.mubr.msk.bf16.vlgmr.msra.gmra.mrb[24].mxu1 %vm401_vm3, %v4688_v58  ;;  %2579 = vmatprep.subr.bf16.mxu0 %v2538_v37  ;;  %v1582_v58 = vsel %vm1579_vm5, %v4753_v30, %v4968_v11  ;;  %v5230_v30 = vld [vmem:[%s5639_s1 + $0x118] sm:$0xff]  }
 0x143   : > { %3734 = vmatpush3.bf16.msra.mxu1 %v1263_v7  ;;  %3725 = vmatprep.mubr.msk.bf16.mxu1 %vm401_vm3, %v4717_v16  ;;  %v5204_v16 = vld [vmem:[%s5639_s1 + $0x108] sm:$0xff]  }
 0x144   : > { %3735 = vmatprep.subr.bf16.mxu1 %v1266_v0 }
 0x147   : > { %3736 = vmatpush3.bf16.msra.mxu1 %v1266_v0  ;;  %3517 = vmatmul.mubr.msk.bf16.gmra.mrb[8].mxu0 %vm401_vm3, %v5184_v51 }
 0x148   : > { %4138 = vmatprep.subr.msk.bf16.mxu1 %vm420_vm2, %v1269_v17  ;;  %2003 = vmatprep.mubr.bf16.mxu0 %v5647_v47  ;;  %v4247_v17 = vld [vmem:[%s5639_s1 + $0x188] sm:$0xff]  }
 0x14a   : > { %3726 = vmatmul.mubr.msk.bf16.gmra.mrb[28].mxu1 %vm401_vm3, %v4751_v2  ;;  %v1585_v2 = vsel %vm1579_vm5, %v4774_v38, %v4980_v3  ;;  %v4237_v3 = vld [vmem:[%s5639_s1 + $0x138] sm:$0xff]  }
 0x14b   : > { %3738 = vmatpush3.bf16.msra.mxu1 %v1301_v57  ;;  %3729 = vmatprep.mubr.msk.bf16.mxu1 %vm401_vm3, %v4779_v40  ;;  %v1588_v40 = vsel %vm1579_vm5, %v4795_v44, %v4983_v13  ;;  %v2537_v44 = vsel %vm2536_vm8, %v5037_v54, %v5025_v1  ;;  %v4238_v13 = vld [vmem:[%s5639_s1 + $0x140] sm:$0xff]   ;;  %v2258_v1 = vsel %vm420_vm2, %v5098_v24, 0 }
 0x14c   : > { %3751 = vmatprep.subr.bf16.mxu1 %v1582_v58  ;;  %v1620_v38 = vsel %vm420_vm2, %v1588_v40, 0 }
 0x14f   : > { %3518 = vmatmul.mubr.msk.bf16.gmra.mrb[12].mxu0 %vm401_vm3, %v5204_v16 }
 0x150   : > { %2013 = vmatprep.mubr.bf16.mxu0 %v5647_v47 }
 0x152   : > { %3730 = vmatmul.mubr.msk.bf16.gmra.mrb[32].mxu1 %vm401_vm3, %v4227_v21  ;;  %v4244_v21 = vld [vmem:[%s5639_s1 + $0x170] sm:$0xff]  }
 0x153   : > { %3739 = vmatprep.mubr.msk.bf16.mxu1 %vm401_vm3, %v4800_v4  ;;  %v5247_v4 = vld [vmem:[%s5639_s1 + $0x120] sm:$0xff]  }
 0x157   : > { %3519 = vmatmul.mubr.msk.bf16.gmra.mrb[16].mxu0 %vm401_vm3, %v5215_v18 }
 0x158   : > { %2023 = vmatprep.mubr.bf16.mxu0 %v5647_v47 }
 0x15a   : > { %3740 = vmatmul.mubr.msk.bf16.vlgmr.msra.gmra.mrb[24].mxu1 %vm401_vm3, %v4835_v55  ;;  %v2541_v55 = vsel %vm2536_vm8, %v5044_v61, %v5047_v5 }
 0x15b   : > { %3752 = vmatpush3.bf16.msra.mxu1 %v1582_v58  ;;  %3743 = vmatprep.mubr.msk.bf16.mxu1 %vm401_vm3, %v4866_v10  ;;  %v2540_v10 = vsel %vm2536_vm8, %v5054_v48, %v5044_v61 }
 0x15c   : > { %3753 = vmatprep.subr.bf16.mxu1 %v1585_v2 }
 0x15f   : > { %3754 = vmatpush3.bf16.msra.mxu1 %v1585_v2  ;;  %3520 = vmatmul.mubr.msk.bf16.gmra.mrb[20].mxu0 %vm401_vm3, %v5230_v30 }
 0x160   : > { %4139 = vmatprep.subr.msk.bf16.mxu1 %vm420_vm2, %v1588_v40  ;;  %2292 = vmatprep.mubr.bf16.mxu0 %v5647_v47  ;;  %v4249_v40 = vld [vmem:[%s5639_s1 + $0x198] sm:$0xff]  }
 0x162   : > { %3744 = vmatmul.mubr.msk.bf16.gmra.mrb[28].mxu1 %vm401_vm3, %v4889_v15  ;;  %v2543_v15 = vsel %vm2536_vm8, %v5056_v52, %v5063_v6 }
 0x163   : > { %3756 = vmatpush3.bf16.msra.mxu1 %v1620_v38  ;;  %3747 = vmatprep.mubr.msk.bf16.mxu1 %vm401_vm3, %v4915_v29  ;;  %v2571_v29 = vsel %vm420_vm2, %v2543_v15, 0  ;;  %v4250_v38 = vld [vmem:[%s5639_s1 + $0x1a0] sm:$0xff]   ;;  %v4251_v15 = vld [vmem:[%s5639_s1 + $0x1a8] sm:$0xff]  }
 0x164   : > { %3769 = vmatprep.subr.bf16.mxu1 %v5005_v60 }
 0x167   : > { %3534 = vmatmul.mubr.msk.bf16.vlgmr.msra.gmra.mrb[0].mxu0 %vm401_vm3, %v5247_v4 }
 0x168   : > { %2302 = vmatprep.mubr.bf16.mxu0 %v5647_v47  ;;  %2580 = vmatpush1.bf16.msra.mxu0 %v2537_v44 }
 0x169   : > { %2581 = vmatprep.subr.bf16.mxu0 %v2541_v55 }
 0x16a   : > { %3748 = vmatmul.mubr.msk.bf16.gmra.mrb[32].mxu1 %vm401_vm3, %v4942_v41  ;;  %v2857_v41 = vsel %vm2855_vm9, %v2834_v43, %v5281_v23 }
 0x16b   : > { %3757 = vmatprep.mubr.msk.bf16.mxu1 %vm401_vm3, %v4966_v14  ;;  %v5649_v14 = vld [vmem:[#allocation2_spill] sm:$0xff] }
 0x16c   : > { %2582 = vmatpush1.bf16.msra.mxu0 %v2540_v10  ;;  %v1939_v11 = vsel %vm420_vm2, %v5649_v14, 0 }
 0x16d   : > { %3552 = vmatprep.subr.msk.bf16.mxu0 %vm420_vm2, %v2544_v20 }
 0x16f   : > { %3535 = vmatmul.mubr.msk.bf16.gmra.mrb[4].mxu0 %vm401_vm3, %v5275_v22 }
 0x170   : > { %2312 = vmatprep.mubr.bf16.mxu0 %v5647_v47  ;;  %2584 = vmatpush1.bf16.msra.mxu0 %v2571_v29 }
 0x171   : > { %2898 = vmatprep.subr.bf16.mxu0 %v2857_v41 }
 0x172   : > { %3758 = vmatmul.mubr.msk.bf16.vlgmr.msra.gmra.mrb[24].mxu1 %vm401_vm3, %v5001_v25  ;;  %v2832_v25 = vpop.permute.xlu0 %2831 }
 0x173   : > { %3770 = vmatpush3.bf16.msra.mxu1 %v5005_v60  ;;  %3761 = vmatprep.mubr.msk.bf16.mxu1 %vm401_vm3, %v5033_v53  ;;  %v4239_v60 = vld [vmem:[%s5639_s1 + $0x148] sm:$0xff]   ;;  %v4240_v53 = vld [vmem:[%s5639_s1 + $0x150] sm:$0xff]   ;;  %v2856_v61 = vsel %vm2855_vm9, %v2832_v25, %v2834_v43 }
 0x174   : > { %3771 = vmatprep.subr.bf16.mxu1 %v5011_v9 }
 0x176   : > { %v2844_v56 = vpop.permute.xlu0 %2843 }
 0x177   : > { %3772 = vmatpush3.bf16.msra.mxu1 %v5011_v9  ;;  %3536 = vmatmul.mubr.msk.bf16.gmra.mrb[8].mxu0 %vm401_vm3, %v5294_v12  ;;  %v2842_v9 = vpop.permute.xlu1 %2841 }
 0x178   : > { %4140 = vmatprep.subr.msk.bf16.mxu1 %vm420_vm2, %v5649_v14  ;;  %2322 = vmatprep.mubr.bf16.mxu0 %v5647_v47  ;;  %v2860_v5 = vsel %vm2855_vm9, %v2842_v9, %v2844_v56 }
 0x17a   : > { %3762 = vmatmul.mubr.msk.bf16.gmra.mrb[28].mxu1 %vm401_vm3, %v5052_v32  ;;  %v2848_v54 = vpop.permute.xlu0 %2847 }
 0x17b   : > { %3774 = vmatpush3.bf16.msra.mxu1 %v1939_v11  ;;  %3765 = vmatprep.mubr.msk.bf16.mxu1 %vm401_vm3, %v5075_v27  ;;  %v2840_v59 = vpop.permute.xlu1 %2839 }
 0x17c   : > { %3787 = vmatprep.subr.bf16.mxu1 %v5081_v33  ;;  %v2859_v32 = vsel %vm2855_vm9, %v2840_v59, %v2842_v9 }
 0x17e   : > { %v2852_v52 = vpop.permute.xlu0 %2851 }
 0x17f   : > { %3537 = vmatmul.mubr.msk.bf16.gmra.mrb[12].mxu0 %vm401_vm3, %v4237_v3  ;;  %v2850_v48 = vpop.permute.xlu1 %2849 }
 0x180   : > { %2332 = vmatprep.mubr.bf16.mxu0 %v5647_v47  ;;  %v2862_v6 = vsel %vm2855_vm9, %v2848_v54, %v2850_v48  ;;  %v2863_v27 = vsel %vm2855_vm9, %v2850_v48, %v2852_v52 }
 0x181   : > { %v2890_v42 = vsel %vm420_vm2, %v2862_v6, 0 }
 0x182   : > { %3766 = vmatmul.mubr.msk.bf16.gmra.mrb[32].mxu1 %vm401_vm3, %v5104_v39  ;;  %v5650_v39 = vld [vmem:[#allocation3_spill] sm:$0xff] }
 0x183   : > { %3775 = vmatprep.mubr.msk.bf16.mxu1 %vm401_vm3, %v5129_v50  ;;  %v2577_v36 = vsel %vm420_vm2, %v5650_v39, 0  ;;  %v2846_v50 = vpop.permute.xlu0 %2845 }
 0x184   : > { %v2861_v62 = vsel %vm2855_vm9, %v2844_v56, %v2846_v50 }
 0x187   : > { %3538 = vmatmul.mubr.msk.bf16.gmra.mrb[16].mxu0 %vm401_vm3, %v4238_v13 }
 0x188   : > { %2342 = vmatprep.mubr.bf16.mxu0 %v5647_v47 }
 0x18a   : > { %3776 = vmatmul.mubr.msk.bf16.vlgmr.msra.gmra.mrb[24].mxu1 %vm401_vm3, %v5161_v49 }
 0x18b   : > { %3788 = vmatpush3.bf16.msra.mxu1 %v5081_v33  ;;  %3779 = vmatprep.mubr.msk.bf16.mxu1 %vm401_vm3, %v5184_v51  ;;  %v4241_v33 = vld [vmem:[%s5639_s1 + $0x158] sm:$0xff]  }
 0x18c   : > { %3789 = vmatprep.subr.bf16.mxu1 %v5093_v46 }
 0x18f   : > { %3790 = vmatpush3.bf16.msra.mxu1 %v5093_v46  ;;  %3539 = vmatmul.mubr.msk.bf16.gmra.mrb[20].mxu0 %vm401_vm3, %v4239_v60  ;;  %v4242_v46 = vld [vmem:[%s5639_s1 + $0x160] sm:$0xff]  }
 0x190   : > { %4141 = vmatprep.subr.msk.bf16.mxu1 %vm420_vm2, %v5098_v24  ;;  %2611 = vmatprep.mubr.bf16.mxu0 %v5647_v47  ;;  %v2838_v24 = vpop.permute.xlu1 %2837 }
 0x192   : > { %3780 = vmatmul.mubr.msk.bf16.gmra.mrb[28].mxu1 %vm401_vm3, %v5204_v16  ;;  %v4248_v16 = vld [vmem:[%s5639_s1 + $0x190] sm:$0xff]  }
 0x193   : > { %3792 = vmatpush3.bf16.msra.mxu1 %v2258_v1  ;;  %3783 = vmatprep.mubr.msk.bf16.mxu1 %vm401_vm3, %v5215_v18 }
 0x194   : > { %3805 = vmatprep.subr.bf16.mxu1 %v5108_v26  ;;  %v2854_v8 = vpop.permute.xlu1 %2853 }
 0x195   : > { %v2864_v31 = vsel %vm2855_vm9, %v2852_v52, %v2854_v8 }
 0x196   : > { %v2896_v63 = vsel %vm420_vm2, %v2864_v31, 0 }
 0x197   : > { %3553 = vmatmul.mubr.msk.bf16.vlgmr.msra.gmra.mrb[0].mxu0 %vm401_vm3, %v4240_v53 }
 0x198   : > { %2621 = vmatprep.mubr.bf16.mxu0 %v5647_v47  ;;  %2899 = vmatpush1.bf16.msra.mxu0 %v2856_v61 }
 0x199   : > { %2900 = vmatprep.subr.bf16.mxu0 %v2860_v5 }
 0x19a   : > { %3784 = vmatmul.mubr.msk.bf16.gmra.mrb[32].mxu1 %vm401_vm3, %v5230_v30 }
 0x19b   : > { %3793 = vmatprep.mubr.msk.bf16.mxu1 %vm401_vm3, %v5247_v4 }
 0x19c   : > { %2901 = vmatpush1.bf16.msra.mxu0 %v2859_v32 }
 0x19d   : > { %3571 = vmatprep.subr.msk.bf16.mxu0 %vm420_vm2, %v2863_v27 }
 0x19f   : > { %3554 = vmatmul.mubr.msk.bf16.gmra.mrb[4].mxu0 %vm401_vm3, %v4241_v33 }
 0x1a0   : > { %2631 = vmatprep.mubr.bf16.mxu0 %v5647_v47  ;;  %2903 = vmatpush1.bf16.msra.mxu0 %v2890_v42 }
 0x1a2   : > { %3794 = vmatmul.mubr.msk.bf16.vlgmr.msra.gmra.mrb[24].mxu1 %vm401_vm3, %v5275_v22 }
 0x1a3   : > { %3806 = vmatpush3.bf16.msra.mxu1 %v5108_v26  ;;  %3797 = vmatprep.mubr.msk.bf16.mxu1 %vm401_vm3, %v5294_v12  ;;  %v2858_v26 = vsel %vm2855_vm9, %v5281_v23, %v2838_v24 }
 0x1a4   : > { %3807 = vmatprep.subr.bf16.mxu1 %v5112_v19 }
 0x1a7   : > { %3808 = vmatpush3.bf16.msra.mxu1 %v5112_v19  ;;  %3555 = vmatmul.mubr.msk.bf16.gmra.mrb[8].mxu0 %vm401_vm3, %v4242_v46  ;;  %v4243_v19 = vld [vmem:[%s5639_s1 + $0x168] sm:$0xff]  }
 0x1a8   : > { %4142 = vmatprep.subr.msk.bf16.mxu1 %vm420_vm2, %v5650_v39  ;;  %2641 = vmatprep.mubr.bf16.mxu0 %v5647_v47 }
 0x1aa   : > { %3798 = vmatmul.mubr.msk.bf16.gmra.mrb[28].mxu1 %vm401_vm3, %v4237_v3 }
 0x1ab   : > { %3810 = vmatpush3.bf16.msra.mxu1 %v2577_v36  ;;  %3801 = vmatprep.mubr.msk.bf16.mxu1 %vm401_vm3, %v4238_v13 }
 0x1ac   : > { %3823 = vmatprep.subr.bf16.mxu1 %v2858_v26 }
 0x1af   : > { %3556 = vmatmul.mubr.msk.bf16.gmra.mrb[12].mxu0 %vm401_vm3, %v4243_v19 }
 0x1b0   : > { %2651 = vmatprep.mubr.bf16.mxu0 %v5647_v47 }
 0x1b2   : > { %3802 = vmatmul.mubr.msk.bf16.gmra.mrb[32].mxu1 %vm401_vm3, %v4239_v60 }
 0x1b3   : > { %3811 = vmatprep.mubr.msk.bf16.mxu1 %vm401_vm3, %v4240_v53 }
 0x1b7   : > { %3557 = vmatmul.mubr.msk.bf16.gmra.mrb[16].mxu0 %vm401_vm3, %v4244_v21 }
 0x1b8   : > { %2661 = vmatprep.mubr.bf16.mxu0 %v5647_v47 }
 0x1ba   : > { %3812 = vmatmul.mubr.msk.bf16.vlgmr.msra.gmra.mrb[24].mxu1 %vm401_vm3, %v4241_v33 }
 0x1bb   : > { %3824 = vmatpush3.bf16.msra.mxu1 %v2858_v26  ;;  %3815 = vmatprep.mubr.msk.bf16.mxu1 %vm401_vm3, %v4242_v46 }
 0x1bc   : > { %3825 = vmatprep.subr.bf16.mxu1 %v2861_v62 }
 0x1bf   : > { %3826 = vmatpush3.bf16.msra.mxu1 %v2861_v62  ;;  %3558 = vmatmul.mubr.msk.bf16.gmra.mrb[20].mxu0 %vm401_vm3, %v4245_v28 }
 0x1c0   : > { %4143 = vmatprep.subr.msk.bf16.mxu1 %vm420_vm2, %v2864_v31  ;;  %2930 = vmatprep.mubr.bf16.mxu0 %v5647_v47 }
 0x1c1   : > { %v735_v34 = vpop.f32.mrb[0].mxu1 }
 0x1c2   : > { %3816 = vmatmul.mubr.msk.bf16.gmra.mrb[28].mxu1 %vm401_vm3, %v4243_v19  ;;  %v737_v49 = vpop.f32.mrb[1].mxu1 }
 0x1c3   : > { %3828 = vmatpush3.bf16.msra.mxu1 %v2896_v63  ;;  %v739_v35 = vpop.f32.mrb[2].mxu1  ;;  %3819 = vmatprep.mubr.msk.bf16.mxu1 %vm401_vm3, %v4244_v21 }
 0x1c4   : > { %v741_v7 = vpop.f32.mrb[3].mxu1 }
 0x1c7   : > { %3572 = vmatmul.mubr.msk.bf16.vlgmr.msra.gmra.mrb[0].mxu0 %vm401_vm3, %v4246_v45 }
 0x1c8   : > { %2940 = vmatprep.mubr.bf16.mxu0 %v5647_v47 }
 0x1c9   : > { %v745_v37 = vpop.f32.mrb[4].mxu1 }
 0x1ca   : > { %3820 = vmatmul.mubr.msk.bf16.gmra.mrb[32].mxu1 %vm401_vm3, %v4245_v28  ;;  %v747_v0 = vpop.f32.mrb[5].mxu1 }
 0x1cb   : > { %v749_v51 = vpop.f32.mrb[6].mxu1  ;;  %3829 = vmatprep.mubr.msk.bf16.mxu1 %vm401_vm3, %v4246_v45 }
 0x1cc   : > { %v751_v57 = vpop.f32.mrb[7].mxu1 }
 0x1cf   : > { %3573 = vmatmul.mubr.msk.bf16.gmra.mrb[4].mxu0 %vm401_vm3, %v4247_v17 }
 0x1d0   : > { %2950 = vmatprep.mubr.bf16.mxu0 %v5647_v47 }
 0x1d1   : > { %v5425_v58 = vpop.f32.mrb[8].mxu1 }
 0x1d2   : > { %3830 = vmatmul.mubr.msk.bf16.vlgmr.msra.gmra.mrb[24].mxu1 %vm401_vm3, %v4247_v17  ;;  %v5431_v18 = vpop.f32.mrb[9].mxu1 }
 0x1d3   : > { %v5433_v2 = vpop.f32.mrb[10].mxu1  ;;  %3833 = vmatprep.mubr.msk.bf16.mxu1 %vm401_vm3, %v4248_v16 }
 0x1d4   : > { %v5436_v30 = vpop.f32.mrb[11].mxu1 }
 0x1d7   : > { %3574 = vmatmul.mubr.msk.bf16.gmra.mrb[8].mxu0 %vm401_vm3, %v4248_v16 }
 0x1d8   : > { %2960 = vmatprep.mubr.bf16.mxu0 %v5647_v47 }
 0x1d9   : > { %v5446_v4 = vpop.f32.mrb[12].mxu1 }
 0x1da   : > { %3834 = vmatmul.mubr.msk.bf16.gmra.mrb[28].mxu1 %vm401_vm3, %v4249_v40  ;;  %v5449_v44 = vpop.f32.mrb[13].mxu1 }
 0x1db   : > { %v5451_v55 = vpop.f32.mrb[14].mxu1  ;;  %3837 = vmatprep.mubr.msk.bf16.mxu1 %vm401_vm3, %v4250_v38 }
 0x1dc   : > { %v5454_v10 = vpop.f32.mrb[15].mxu1 }
 0x1df   : > { %3575 = vmatmul.mubr.msk.bf16.gmra.mrb[12].mxu0 %vm401_vm3, %v4249_v40 }
 0x1e0   : > { %2970 = vmatprep.mubr.bf16.mxu0 %v5647_v47 }
 0x1e1   : > { %v5461_v20 = vpop.f32.mrb[16].mxu1 }
 0x1e2   : > { %3838 = vmatmul.mubr.msk.bf16.gmra.mrb[32].mxu1 %vm401_vm3, %v4251_v15  ;;  %v5464_v22 = vpop.f32.mrb[17].mxu1 }
 0x1e3   : > { %v5466_v29 = vpop.f32.mrb[18].mxu1 }
 0x1e4   : > { %v5468_v23 = vpop.f32.mrb[19].mxu1 }
 0x1e7   : > { %3576 = vmatmul.mubr.msk.bf16.gmra.mrb[16].mxu0 %vm401_vm3, %v4250_v38 }
 0x1e8   : > { %2980 = vmatprep.mubr.bf16.mxu0 %v5647_v47 }
 0x1ef   : > { %3577 = vmatmul.mubr.msk.bf16.gmra.mrb[20].mxu0 %vm401_vm3, %v4251_v15 }
 0x209   : > { %v5473_v43 = vpop.f32.mrb[20].mxu1 }
 0x20a   : > { %v5475_v41 = vpop.f32.mrb[21].mxu1 }
 0x20b   : > { %v5477_v12 = vpop.f32.mrb[22].mxu1 }
 0x20c   : > { %v5479_v14 = vpop.f32.mrb[23].mxu1 }
 0x29a   : > { %v2932_v11 = vpop.f32.mrb[0].mxu0 }
 0x29b   : > { %v3847_v3 = vadd.f32 %v2932_v11, %v735_v34  ;;  %v2934_v13 = vpop.f32.mrb[1].mxu0 }
 0x29c   : > { %v3848_v25 = vadd.f32 %v2934_v13, %v737_v49  ;;  %v2936_v60 = vpop.f32.mrb[2].mxu0 }
 0x29d   : > { %v3584_v9 = vmul.f32 -1.442695, %v3847_v3  ;;  %v3849_v56 = vadd.f32 %v2936_v60, %v739_v35  ;;  %v2938_v1 = vpop.f32.mrb[3].mxu0 }
 0x29e   : > { %v3585_v53 = vmul.f32 -1.442695, %v3848_v25  ;;  %v3850_v47 = vadd.f32 %v2938_v1, %v741_v7 }
 0x29f   : > { %4252 = vpow2.f32 %v3584_v9  ;;  %v3587_v59 = vmul.f32 -1.442695, %v3849_v56 }
 0x2a0   : > { %v3588_v54 = vmul.f32 -1.442695, %v3850_v47  ;;  %4254 = vpow2.f32 %v3585_v53 }
 0x2a1   : > { %4256 = vpow2.f32 %v3587_v59 }
 0x2a2   : > { %v2942_v61 = vpop.f32.mrb[4].mxu0  ;;  %4258 = vpow2.f32 %v3588_v54 }
 0x2a3   : > { %v3851_v5 = vadd.f32 %v2942_v61, %v745_v37  ;;  %v2944_v32 = vpop.f32.mrb[5].mxu0 }
 0x2a4   : > { %v3852_v48 = vadd.f32 %v2944_v32, %v747_v0  ;;  %v2946_v52 = vpop.f32.mrb[6].mxu0 }
 0x2a5   : > { %v3590_v6 = vmul.f32 -1.442695, %v3851_v5  ;;  %v3853_v27 = vadd.f32 %v2946_v52, %v749_v51  ;;  %v2948_v33 = vpop.f32.mrb[7].mxu0  ;;  %v3831_v42 = vpop.f32.mrb[24].mxu1 }
 0x2a6   : > { %v3591_v46 = vmul.f32 -1.442695, %v3852_v48  ;;  %v3854_v24 = vadd.f32 %v2948_v33, %v751_v57  ;;  %v3025_v39 = vpop.f32.mrb[25].mxu1  ;;  %v3592_v36 = vmul.f32 -1.442695, %v3831_v42 }
 0x2a7   : > { %4260 = vpow2.f32 %v3590_v6  ;;  %v3593_v26 = vmul.f32 -1.442695, %v3853_v27  ;;  %v3832_v19 = vpop.f32.mrb[26].mxu1  ;;  %v3586_v49 = vmul.f32 -1.442695, %v3025_v39 }
 0x2a8   : > { %4262 = vpow2.f32 %v3591_v46  ;;  %v3594_v21 = vmul.f32 -1.442695, %v3854_v24  ;;  %v3028_v50 = vpop.f32.mrb[27].mxu1  ;;  %v3595_v37 = vmul.f32 -1.442695, %v3832_v19 }
 0x2a9   : > { %v4253_v62 = vpop.eup %4252  ;;  %4264 = vpow2.f32 %v3593_v26  ;;  %v3589_v16 = vmul.f32 -1.442695, %v3028_v50 }
 0x2aa   : > { %4266 = vpow2.f32 %v3594_v21  ;;  %v2952_v8 = vpop.f32.mrb[8].mxu0  ;;  %v3144_v28 = vadd.f32 1.0, %v4253_v62  ;;  %v4255_v34 = vpop.eup %4254 }
 0x2ab   : > { %4268 = vpow2.f32 %v3592_v36  ;;  %v5482_v31 = vadd.f32 %v2952_v8, %v5425_v58  ;;  %v2954_v63 = vpop.f32.mrb[9].mxu0  ;;  %v4257_v7 = vpop.eup %4256  ;;  %v3145_v38 = vadd.f32 1.0, %v4255_v34 }
 0x2ac   : > { %v5485_v35 = vadd.f32 %v2954_v63, %v5431_v18  ;;  %v2956_v45 = vpop.f32.mrb[10].mxu0  ;;  %v4259_v57 = vpop.eup %4258  ;;  %4270 = vrcp.f32 %v3144_v28  ;;  %v3147_v15 = vadd.f32 1.0, %v4257_v7 }
 0x2ad   : > { %v5488_v0 = vadd.f32 %v2956_v45, %v5433_v2  ;;  %v2958_v51 = vpop.f32.mrb[11].mxu0  ;;  %v5490_v17 = vpop.f32.mrb[28].mxu1  ;;  %4272 = vpow2.f32 %v3586_v49  ;;  %v3148_v3 = vadd.f32 1.0, %v4259_v57 }
 0x2ae   : > { %v5493_v58 = vadd.f32 %v2958_v51, %v5436_v30  ;;  %v5495_v40 = vpop.f32.mrb[29].mxu1  ;;  %4274 = vpow2.f32 %v3595_v37 }
 0x2af   : > { %v5497_v18 = vpop.f32.mrb[30].mxu1  ;;  %4276 = vpow2.f32 %v3589_v16 }
 0x2b0   : > { %v5499_v11 = vpop.f32.mrb[31].mxu1  ;;  %4278 = vrcp.f32 %v3145_v38 }
 0x2b1   : > { %v4261_v2 = vpop.eup %4260  ;;  %4280 = vrcp.f32 %v3147_v15 }
 0x2b2   : > { %v4263_v13 = vpop.eup %4262  ;;  %v2962_v25 = vpop.f32.mrb[12].mxu0  ;;  %4282 = vrcp.f32 %v3148_v3  ;;  %v3150_v59 = vadd.f32 1.0, %v4261_v2 }
 0x2b3   : > { %v4265_v60 = vpop.eup %4264  ;;  %v5502_v30 = vadd.f32 %v2962_v25, %v5446_v4  ;;  %v2964_v9 = vpop.f32.mrb[13].mxu0  ;;  %v3151_v32 = vadd.f32 1.0, %v4263_v13 }
 0x2b4   : > { %v4267_v56 = vpop.eup %4266  ;;  %v5505_v1 = vadd.f32 %v2964_v9, %v5449_v44  ;;  %v2966_v53 = vpop.f32.mrb[14].mxu0  ;;  %v3153_v6 = vadd.f32 1.0, %v4265_v60 }
 0x2b5   : > { %v4269_v47 = vpop.eup %4268  ;;  %v5508_v54 = vadd.f32 %v2966_v53, %v5451_v55  ;;  %v2968_v61 = vpop.f32.mrb[15].mxu0  ;;  %v3154_v44 = vadd.f32 1.0, %v4267_v56 }
 0x2b6   : > { %v3839_v5 = vpop.f32.mrb[32].mxu1  ;;  %v3152_v48 = vadd.f32 1.0, %v4269_v47  ;;  %v5511_v4 = vadd.f32 %v2968_v61, %v5454_v10  ;;  %v5519_v42 = vpop.eup %4270 }
 0x2b7   : > { %v5513_v52 = vpop.f32.mrb[33].mxu1  ;;  %v4273_v55 = vpop.eup %4272 }
 0x2b8   : > { %v5515_v27 = vpop.f32.mrb[34].mxu1  ;;  %4284 = vrcp.f32 %v3152_v48  ;;  %v4275_v24 = vpop.eup %4274  ;;  %v3146_v39 = vadd.f32 1.0, %v4273_v55 }
 0x2b9   : > { %v5517_v33 = vpop.f32.mrb[35].mxu1  ;;  %4286 = vrcp.f32 %v3150_v59  ;;  %v4277_v36 = vpop.eup %4276  ;;  %v3155_v19 = vadd.f32 1.0, %v4275_v24 }
 0x2ba   : > { %4288 = vrcp.f32 %v3151_v32  ;;  %v2972_v46 = vpop.f32.mrb[16].mxu0  ;;  %v5523_v62 = vpop.eup %4278  ;;  %v3149_v8 = vadd.f32 1.0, %v4277_v36 }
 0x2bb   : > { %4290 = vrcp.f32 %v3153_v6  ;;  %v3863_v10 = vadd.f32 %v2972_v46, %v5461_v20  ;;  %v2974_v26 = vpop.f32.mrb[17].mxu0  ;;  %v5527_v49 = vpop.eup %4280  ;;  %v3216_v6 = vld [vmem:[%s5561_s25] sm:$0xff] }
 0x2bc   : > { %4292 = vrcp.f32 %v3154_v44  ;;  %v3864_v21 = vadd.f32 %v2974_v26, %v5464_v22  ;;  %v2976_v50 = vpop.f32.mrb[18].mxu0  ;;  %v5531_v7 = vpop.eup %4282 }
 0x2bd   : > { %4294 = vrcp.f32 %v3146_v39  ;;  %v3180_v28 = vmul.f32 %v5519_v42, %v3863_v10  ;;  %v3865_v63 = vadd.f32 %v2976_v50, %v5466_v29  ;;  %v2978_v34 = vpop.f32.mrb[19].mxu0 }
 0x2be   : > { %4296 = vrcp.f32 %v3155_v19  ;;  %v3181_v20 = vmul.f32 %v5523_v62, %v3864_v21  ;;  %v3866_v45 = vadd.f32 %v2978_v34, %v5468_v23  ;;  %v3222_v34 = vld [vmem:[%s5561_s25 + $0x30] sm:$0xff] }
 0x2bf   : > { %4298 = vrcp.f32 %v3149_v8  ;;  %v3192_v22 = vadd.f32 %v5482_v31, %v3180_v28  ;;  %v3183_v37 = vmul.f32 %v5527_v49, %v3865_v63 }
 0x2c0   : > { %v3193_v51 = vadd.f32 %v5485_v35, %v3181_v20  ;;  %v3184_v57 = vmul.f32 %v5531_v7, %v3866_v45 }
 0x2c1   : > { %4300 = vtanh.f32 %v3192_v22  ;;  %v3195_v29 = vadd.f32 %v5488_v0, %v3183_v37  ;;  %v3223_v22 = vld [vmem:[%s5561_s25 + $0x38] sm:$0xff] }
 0x2c2   : > { %v5538_v16 = vpop.eup %4284  ;;  %4302 = vtanh.f32 %v3193_v51  ;;  %v3196_v23 = vadd.f32 %v5493_v58, %v3184_v57  ;;  %v2982_v38 = vpop.f32.mrb[20].mxu0  ;;  %v3225_v51 = vld [vmem:[%s5561_s25 + $0x48] sm:$0xff] }
 0x2c3   : > { %v5542_v15 = vpop.eup %4286  ;;  %v3188_v31 = vmul.f32 %v5538_v16, %v3839_v5  ;;  %4304 = vtanh.f32 %v3195_v29  ;;  %v3867_v35 = vadd.f32 %v2982_v38, %v5473_v43  ;;  %v2984_v2 = vpop.f32.mrb[21].mxu0  ;;  %v3218_v29 = vld [vmem:[%s5561_s25 + $0x10] sm:$0xff]  ;;  %v3227_v38 = vld [vmem:[%s5561_s25 + $0x58] sm:$0xff] }
 0x2c4   : > { %v5546_v3 = vpop.eup %4288  ;;  %4306 = vtanh.f32 %v3196_v23  ;;  %v3868_v0 = vadd.f32 %v2984_v2, %v5475_v41  ;;  %v2986_v13 = vpop.f32.mrb[22].mxu0 }
 0x2c5   : > { %v5549_v25 = vpop.eup %4290  ;;  %v3200_v58 = vadd.f32 %v5490_v17, %v3188_v31  ;;  %v3186_v60 = vmul.f32 %v5542_v15, %v3867_v35  ;;  %v3869_v9 = vadd.f32 %v2986_v13, %v5477_v12  ;;  %v2988_v56 = vpop.f32.mrb[23].mxu0 }
 0x2c6   : > { %v5554_v53 = vpop.eup %4292  ;;  %v3187_v43 = vmul.f32 %v5546_v3, %v3868_v0  ;;  %v3870_v41 = vadd.f32 %v2988_v56, %v5479_v14  ;;  %v3221_v0 = vld [vmem:[%s5561_s25 + $0x28] sm:$0xff]  ;;  %v3226_v56 = vld [vmem:[%s5561_s25 + $0x50] sm:$0xff] }
 0x2c7   : > { %v5565_v17 = vpop.eup %4294  ;;  %4308 = vtanh.f32 %v3200_v58  ;;  %v3198_v12 = vadd.f32 %v5502_v30, %v3186_v60  ;;  %v3189_v47 = vmul.f32 %v5549_v25, %v3869_v9 }
 0x2c8   : > { %v5569_v59 = vpop.eup %4296  ;;  %v3182_v61 = vmul.f32 %v5565_v17, %v5513_v52  ;;  %v3199_v5 = vadd.f32 %v5505_v1, %v3187_v43  ;;  %v3190_v32 = vmul.f32 %v5554_v53, %v3870_v41  ;;  %v3217_v52 = vld [vmem:[%s5561_s25 + $0x8] sm:$0xff] }
 0x2c9   : > { %v5575_v48 = vpop.eup %4298  ;;  %v3191_v14 = vmul.f32 %v5569_v59, %v5515_v27  ;;  %4310 = vtanh.f32 %v3198_v12  ;;  %v3201_v30 = vadd.f32 %v5508_v54, %v3189_v47  ;;  %v3219_v27 = vld [vmem:[%s5561_s25 + $0x18] sm:$0xff] }
 0x2ca   : > { %v3194_v44 = vadd.f32 %v3182_v61, %v5495_v40  ;;  %v3185_v55 = vmul.f32 %v5575_v48, %v5517_v33  ;;  %4312 = vtanh.f32 %v3199_v5  ;;  %v3202_v1 = vadd.f32 %v5511_v4, %v3190_v32  ;;  %v3220_v40 = vld [vmem:[%s5561_s25 + $0x20] sm:$0xff] }
 0x2cb   : > { %v4301_v46 = vpop.eup %4300  ;;  %v3203_v24 = vadd.f32 %v5497_v18, %v3191_v14  ;;  %4314 = vtanh.f32 %v3201_v30  ;;  %v3224_v18 = vld [vmem:[%s5561_s25 + $0x40] sm:$0xff] }
 0x2cc   : > { %v4303_v39 = vpop.eup %4302  ;;  %4316 = vtanh.f32 %v3194_v44  ;;  %v3197_v54 = vadd.f32 %v3185_v55, %v5499_v11  ;;  %v3228_v10 = vsub.f32 %v3216_v6, %v4301_v46 }
 0x2cd   : > { %v4305_v26 = vpop.eup %4304  ;;  %4318 = vtanh.f32 %v3203_v24  ;;  %v3229_v33 = vsub.f32 %v3217_v52, %v4303_v39 }
 0x2ce   : > { %v4307_v36 = vpop.eup %4306  ;;  %4320 = vtanh.f32 %v3197_v54  ;;  %v3240_v4 = vmul.f32 %v5519_v42, %v3228_v10  ;;  %v3231_v19 = vsub.f32 %v3219_v27, %v4305_v26 }
 0x2cf   : > { %v3241_v11 = vmul.f32 %v5523_v62, %v3229_v33  ;;  %v3232_v21 = vsub.f32 %v3220_v40, %v4307_v36  ;;  %4322 = vtanh.f32 %v3202_v1 }
 0x2d0   : > { %v3252_v50 = vadd.f32 %v4301_v46, %v3240_v4  ;;  %v3243_v42 = vmul.f32 %v5527_v49, %v3231_v19 }
 0x2d1   : > { %v4309_v8 = vpop.eup %4308  ;;  %v3253_v28 = vadd.f32 %v4303_v39, %v3241_v11  ;;  %v3244_v63 = vmul.f32 %v5531_v7, %v3232_v21 }
 0x2d2   : > { %v3236_v20 = vsub.f32 %v3224_v18, %v4309_v8  ;;  %3264 = vst [vmem:[%s5596_s28] sm:$0xff] %v3252_v50  ;;  %v3255_v45 = vadd.f32 %v4305_v26, %v3243_v42 }
 0x2d3   : > { %v4311_v62 = vpop.eup %4310  ;;  %3265 = vst [vmem:[%s5596_s28 + $0x8] sm:$0xff] %v3253_v28  ;;  %v3256_v37 = vadd.f32 %v4307_v36, %v3244_v63 }
 0x2d4   : > { %v4313_v57 = vpop.eup %4312  ;;  %v3248_v49 = vmul.f32 %v5538_v16, %v3236_v20  ;;  %3267 = vst [vmem:[%s5596_s28 + $0x18] sm:$0xff] %v3255_v45  ;;  %v3234_v7 = vsub.f32 %v3222_v34, %v4311_v62 }
 0x2d5   : > { %v4315_v23 = vpop.eup %4314  ;;  %3268 = vst [vmem:[%s5596_s28 + $0x20] sm:$0xff] %v3256_v37  ;;  %v3235_v31 = vsub.f32 %v3223_v22, %v4313_v57 }
 0x2d6   : > { %v4317_v35 = vpop.eup %4316  ;;  %v3260_v2 = vadd.f32 %v4309_v8, %v3248_v49  ;;  %v3246_v13 = vmul.f32 %v5542_v15, %v3234_v7  ;;  %v3237_v58 = vsub.f32 %v3225_v51, %v4315_v23 }
 0x2d7   : > { %v4319_v60 = vpop.eup %4318  ;;  %v3230_v9 = vsub.f32 %v3218_v29, %v4317_v35  ;;  %v3247_v16 = vmul.f32 %v5546_v3, %v3235_v31 }
 0x2d8   : > { %v4321_v43 = vpop.eup %4320  ;;  %3272 = vst [vmem:[%s5596_s28 + $0x40] sm:$0xff] %v3260_v2  ;;  %v3239_v41 = vsub.f32 %v3227_v38, %v4319_v60  ;;  %v3258_v12 = vadd.f32 %v4311_v62, %v3246_v13  ;;  %v3249_v47 = vmul.f32 %v5549_v25, %v3237_v58 }
 0x2d9   : > { %v4323_v61 = vpop.eup %4322  ;;  %v3242_v15 = vmul.f32 %v5565_v17, %v3230_v9  ;;  %v3233_v5 = vsub.f32 %v3221_v0, %v4321_v43  ;;  %v3259_v32 = vadd.f32 %v4313_v57, %v3247_v16 }
 0x2da   : > { %v3251_v3 = vmul.f32 %v5569_v59, %v3239_v41  ;;  %3270 = vst [vmem:[%s5596_s28 + $0x30] sm:$0xff] %v3258_v12  ;;  %v3261_v14 = vadd.f32 %v4315_v23, %v3249_v47  ;;  %v3238_v6 = vsub.f32 %v3226_v56, %v4323_v61 }
 0x2db   : > { %v3254_v30 = vadd.f32 %v4317_v35, %v3242_v15  ;;  %v3245_v44 = vmul.f32 %v5575_v48, %v3233_v5  ;;  %3271 = vst [vmem:[%s5596_s28 + $0x38] sm:$0xff] %v3259_v32 }
 0x2dc   : > { %v3263_v55 = vadd.f32 %v4319_v60, %v3251_v3  ;;  %3273 = vst [vmem:[%s5596_s28 + $0x48] sm:$0xff] %v3261_v14  ;;  %v3250_v25 = vmul.f32 %v5554_v53, %v3238_v6 }
 0x2dd   : > { %3266 = vst [vmem:[%s5596_s28 + $0x10] sm:$0xff] %v3254_v30  ;;  %v3257_v52 = vadd.f32 %v4321_v43, %v3245_v44 }
 0x2de   : > { %3275 = vst [vmem:[%s5596_s28 + $0x58] sm:$0xff] %v3263_v55  ;;  %v3262_v17 = vadd.f32 %v4323_v61, %v3250_v25 }
 0x2df   : > { %3269 = vst [vmem:[%s5596_s28 + $0x28] sm:$0xff] %v3257_v52 }
 0x2e0   : > { %3274 = vst [vmem:[%s5596_s28 + $0x50] sm:$0xff] %v3262_v17 }
 0x2e1 PF: > { %s13_s14 = sadd.s32 1, %s4346_s14   ;;  %s5651_s12 = smov %s4342_s13 }
 0x2e2   : > { %p10_p5 = scmp.ge.s32.totalorder %s13_s14, 4   ;;  %s5652_s13 = smov %s5654_s15 }
 0x2e4   :  { %12 = sbr.rel (!%p10_p5) target bundleno = 2 (0x2), region = 65 }

</bundles_post_ra>
